<compile_context>
chip_gen: v7x
topology: tpu7x:2x2x1
jax: 0.10.0
libtpu: 0.0.40
codegen_flags: <defaults>
</compile_context>

<pallas_src>
import jax
import jax.numpy as jnp
from jax import lax
from jax.experimental import pallas as pl
from jax.experimental.pallas import tpu as pltpu

EPS = 1e-5  # nn.InstanceNorm2d default eps


def _pick_tile_rows(H, W):
    # Prefer row bands whose flattened size (rows*W) is a multiple of 128 so
    # each per-band output block is an unmasked, lane-dense store; otherwise
    # fall back to a single band (block == full array is always legal).
    for cand in (16, 8, 32, 4, 2, 1):
        if H % cand == 0 and (cand * W) % 128 == 0:
            return cand
    return H


def _make_inconv_kernel(kh, KWp, Cout, W, tile_rows, HW):
    K = kh * KWp
    inv_hw = 1.0 / float(HW)
    align = KWp & (-KWp)  # largest power-of-two divisor of KWp (window stride)

    def kernel(x_ref, w_ref, o_ref, sum_ref, sq_ref):
        # x_ref:   (Hp*KWp, W)  kw-expanded, reflection-padded sample (resident)
        # w_ref:   (Cout, K)    conv weight flattened to a single K contraction
        # o_ref:   (Cout, band) lane-dense output block for the current row band
        # sum_ref: (Cout, W)    running elementwise per-channel sum     (f32)
        # sq_ref:  (Cout, W)    running elementwise per-channel sum-sq  (f32)
        p = pl.program_id(1)  # 0: conv + stats sweep, 1: normalize + ReLU sweep
        t = pl.program_id(2)  # row-band index
        w = w_ref[...]

        def row_conv(r):
            # Output row rr = t*tile_rows + r needs padded-input rows
            # rr .. rr+kh-1, i.e. the contiguous sublane range
            # [rr*KWp, rr*KWp + K) of x_ref.  KWp is a sublane-tile multiple,
            # so the slice is tile-aligned.  One K-deep MXU matmul per row.
            start = pl.multiple_of((t * tile_rows + r) * KWp, align)
            win = x_ref[pl.ds(start, K), :]                     # (K, W)
            return jnp.dot(w, win, preferred_element_type=jnp.float32)

        @pl.when(jnp.logical_and(p == 0, t == 0))
        def _init():
            sum_ref[...] = jnp.zeros_like(sum_ref)
            sq_ref[...] = jnp.zeros_like(sq_ref)

        @pl.when(p == 0)
        def _conv_and_stats():
            # Conv bias intentionally omitted: InstanceNorm2d(affine=False)
            # subtracts the per-channel mean right after -> exact no-op.
            s = sum_ref[...]
            q = sq_ref[...]
            for r in range(tile_rows):      # static unroll; live range = 1 row
                y = row_conv(r)
                s = s + y                   # elementwise VPU accumulation —
                q = q + y * y               # no per-row cross-lane reduce
            sum_ref[...] = s
            sq_ref[...] = q

        @pl.when(p == 1)
        def _normalize():
            # Lane-reduce the band accumulators here: 2*nT XLU reduces per
            # sample (vs 2*H before).  Accumulation stayed in f32 to keep the
            # single-pass E[x^2]-E[x]^2 variance well conditioned.
            mean = jnp.sum(sum_ref[...], axis=1, keepdims=True) * inv_hw
            ex2 = jnp.sum(sq_ref[...], axis=1, keepdims=True) * inv_hw
            var = jnp.maximum(ex2 - mean * mean, 0.0)
            scale = lax.rsqrt(var + EPS)
            for r in range(tile_rows):
                # Recompute the conv (cheap) instead of keeping an
                # (nT, Cout, band) VMEM scratch alive.
                y = (row_conv(r) - mean) * scale
                o_ref[:, r * W:(r + 1) * W] = (
                    jnp.maximum(y, 0.0).astype(o_ref.dtype))

    return kernel


def inconv_forward(x_nchw, weight, bias=None, *, tile_rows=None,
                   compute_dtype=jnp.bfloat16, out_dtype=jnp.float32):
    """pix2pix Inconv forward: pad(3) -> conv7x7 -> InstanceNorm -> ReLU.

    x_nchw: (N, Cin, H, W); weight: (Cout, Cin, 7, 7); bias: (Cout,) or None.
    `bias` is accepted for API parity but unused: InstanceNorm2d(affine=False)
    cancels a per-channel constant exactly.  (Callers reusing this kernel
    WITHOUT the instance norm would need to add the bias back.)
    """
    N, Cin, H, W = x_nchw.shape
    Cout, wc_in, kh, kw = weight.shape
    assert wc_in == Cin, (wc_in, Cin)
    pad = kh // 2
    Hp = H + 2 * pad
    KW = kw * Cin
    HW = H * W

    # Pad the (dj, ci) axis to a sublane-tile multiple of the compute dtype
    # (8 for f32, 16 for bf16) so every per-row window slice is tile-aligned.
    sub = 8 * (4 // jnp.dtype(compute_dtype).itemsize)
    KWp = -(-KW // sub) * sub
    K = kh * KWp

    if tile_rows is None:
        tile_rows = _pick_tile_rows(H, W)
    if H % tile_rows != 0 or ((tile_rows * W) % 128 != 0 and tile_rows != H):
        raise ValueError(f"invalid tile_rows={tile_rows} for H={H}, W={W}")
    nT = H // tile_rows
    band = tile_rows * W

    # ---- host-side layout glue (tiny, no conv FLOPs) ----
    # ReflectionPad2d(3) directly in NCHW.
    xp = jnp.pad(x_nchw, ((0, 0), (0, 0), (pad, pad), (pad, pad)),
                 mode="reflect")
    # kw-only patch expansion (7x raw input bytes, not 49x for a full im2col):
    #   xk[n, h, dj*Cin + ci, c] = xp[n, ci, h, c + dj]
    xk = jnp.concatenate(
        [jnp.transpose(xp[:, :, :, dj:dj + W], (0, 2, 1, 3))
         for dj in range(kw)],
        axis=2)                                            # (N, Hp, KW, W)
    if KWp != KW:
        xk = jnp.pad(xk, ((0, 0), (0, 0), (0, KWp - KW), (0, 0)))
    xk = xk.reshape(N, Hp * KWp, W).astype(compute_dtype)  # (N, Hp*KWp, W)

    # Cross-correlation weight reorder + same padding:
    #   w_flat[co, di*KWp + dj*Cin + ci] = weight[co, ci, di, dj]
    w_flat = jnp.transpose(weight, (0, 2, 3, 1)).reshape(Cout, kh, KW)
    if KWp != KW:
        w_flat = jnp.pad(w_flat, ((0, 0), (0, 0), (0, KWp - KW)))
    w_flat = w_flat.reshape(Cout, K).astype(compute_dtype)

    del bias  # exactly cancelled by InstanceNorm2d(affine=False); see docstring

    kernel = _make_inconv_kernel(kh, KWp, Cout, W, tile_rows, HW)

    # Explicit VMEM budget: double-buffered resident sample + weight + output
    # band blocks + f32 stat scratches, with 2x headroom, clamped to a range
    # that is safe on v5e/v6e/v7x.
    in_b = jnp.dtype(compute_dtype).itemsize
    out_b = jnp.dtype(out_dtype).itemsize
    working = (2 * (Hp * KWp * W * in_b + Cout * K * in_b + Cout * band * out_b)
               + 2 * Cout * W * 4)
    vmem_limit = int(min(48 << 20, max(32 << 20, 2 * working)))

    out = pl.pallas_call(
        kernel,
        out_shape=jax.ShapeDtypeStruct((N, Cout, HW), out_dtype),
        grid_spec=pltpu.PrefetchScalarGridSpec(
            num_scalar_prefetch=0,
            # samples x {conv+stats sweep, normalize sweep} x row-bands
            grid=(N, 2, nT),
            in_specs=[
                # Whole kw-expanded padded sample stays resident across the
                # (p, t) sweeps (re-fetched only when n changes).
                pl.BlockSpec((None, Hp * KWp, W), lambda n, p, t: (n, 0, 0)),
                pl.BlockSpec((Cout, K), lambda n, p, t: (0, 0)),
            ],
            # Lane-dense (Cout, band) output blocks, written only during the
            # normalize sweep.  NOTE: the p*t index pins the mapped block at 0
            # through the whole conv sweep, so the held (unwritten) buffer is
            # never flushed; it is fully written at (p=1, t=0) before its first
            # flush.  Re-verify if pipelining (Buffered depth / RevisitMode)
            # semantics ever change.
            out_specs=pl.BlockSpec((None, Cout, band),
                                   lambda n, p, t: (n, 0, p * t)),
            scratch_shapes=[
                pltpu.VMEM((Cout, W), jnp.float32),   # per-channel running sum
                pltpu.VMEM((Cout, W), jnp.float32),   # per-channel running sumsq
            ],
        ),
        compiler_params=pltpu.CompilerParams(
            # N is megacore-parallel; the phase/band axes carry the
            # instance-norm reduction and the two-sweep ordering.
            dimension_semantics=("parallel", "arbitrary", "arbitrary"),
            vmem_limit_bytes=vmem_limit),
    )(xk, w_flat)

    # (N, Cout, H*W) -> NCHW is a free reshape (no transpose, no extra HBM pass)
    return out.reshape(N, Cout, H, W)


def _reference(x_nchw, weight, bias):
    """Pure-JAX f32 reference of the same forward pass (with the conv bias)."""
    pad = weight.shape[-1] // 2
    xp = jnp.pad(x_nchw, ((0, 0), (0, 0), (pad, pad), (pad, pad)),
                 mode="reflect")
    y = lax.conv_general_dilated(
        xp, weight, window_strides=(1, 1), padding="VALID",
        dimension_numbers=("NCHW", "OIHW", "NCHW"))
    y = y + bias[None, :, None, None]
    mean = jnp.mean(y, axis=(2, 3), keepdims=True)
    var = jnp.mean((y - mean) ** 2, axis=(2, 3), keepdims=True)
    y = (y - mean) * lax.rsqrt(var + EPS)
    return jnp.maximum(y, 0.0)


if __name__ == "__main__":
    key = jax.random.PRNGKey(0)
    k_x, k_w, k_b = jax.random.split(key, 3)

    N, Cin, H, W = 2, 3, 16, 16
    Cout, kh, kw = 8, 7, 7

    x = jax.random.normal(k_x, (N, Cin, H, W), dtype=jnp.float32)
    fan_in = Cin * kh * kw
    bound = 1.0 / float(fan_in) ** 0.5
    weight = jax.random.uniform(k_w, (Cout, Cin, kh, kw),
                                minval=-bound, maxval=bound, dtype=jnp.float32)
    bias = jax.random.uniform(k_b, (Cout,),
                              minval=-bound, maxval=bound, dtype=jnp.float32)

    ref = jax.block_until_ready(_reference(x, weight, bias))

    # Exact-fidelity f32 path, multi-band (tile_rows=8 -> nT=2).
    out_f32 = jax.block_until_ready(
        inconv_forward(x, weight, bias, tile_rows=8,
                       compute_dtype=jnp.float32))
    assert out_f32.shape == (N, Cout, H, W), out_f32.shape
    err_f32 = float(jnp.max(jnp.abs(out_f32 - ref)))
    assert jnp.allclose(out_f32, ref, atol=1e-4, rtol=1e-4), err_f32

    # Default fast path: bf16 inputs (f32 MXU accumulate), single band.
    out_bf16 = jax.block_until_ready(inconv_forward(x, weight, bias))
    assert out_bf16.shape == (N, Cout, H, W), out_bf16.shape
    err_bf16 = float(jnp.max(jnp.abs(out_bf16 - ref)))
    assert jnp.allclose(out_bf16, ref, atol=5e-2, rtol=5e-2), err_bf16

    print("KERNEL_OK")
</pallas_src>

<mosaic_0001>
module attributes {stable_mosaic.version = 11 : i64} {
  func.func @kernel(%arg0: i32, %arg1: i32, %arg2: i32, %arg3: memref<1x528x16xf32, #tpu.memory_space<vmem>>, %arg4: memref<8x168xf32, #tpu.memory_space<vmem>>, %arg5: memref<1x8x128xf32, #tpu.memory_space<vmem>>, %arg6: memref<8x16xf32, #tpu.memory_space<vmem>>, %arg7: memref<8x16xf32, #tpu.memory_space<vmem>>) attributes {dimension_semantics = [#tpu.dimension_semantics<parallel>, #tpu.dimension_semantics<arbitrary>, #tpu.dimension_semantics<arbitrary>], iteration_bounds = array<i64: 2, 2, 2>, scalar_prefetch = 0 : i64, scratch_operands = 2 : i64, tpu.core_type = #tpu.core_type<tc>, window_params = [{transform_indices = @transform_0, window_bounds = array<i64: 1, 528, 16>}, {pipeline_mode = #tpu.pipeline_mode<synchronous>, transform_indices = @transform_1, window_bounds = array<i64: 8, 168>}, {transform_indices = @transform_2, window_bounds = array<i64: 1, 8, 128>}]} {
    %c0 = arith.constant 0 : index
    %c0_0 = arith.constant 0 : index
    %0 = vector.load %arg4[%c0, %c0_0] : memref<8x168xf32, #tpu.memory_space<vmem>>, vector<8x168xf32>
    %c0_i32 = arith.constant 0 : i32
    %1 = arith.cmpi eq, %arg1, %c0_i32 : i32
    %c0_i32_1 = arith.constant 0 : i32
    %2 = arith.cmpi eq, %arg2, %c0_i32_1 : i32
    %3 = arith.andi %1, %2 : i1
    %4 = arith.extui %3 : i1 to i32
    %c0_i32_2 = arith.constant 0 : i32
    %5 = arith.cmpi ne, %4, %c0_i32_2 : i32
    scf.if %5 {
      %cst = arith.constant 0.000000e+00 : f32
      %12 = vector.broadcast %cst : f32 to vector<8x16xf32>
      %c0_6 = arith.constant 0 : index
      %c0_7 = arith.constant 0 : index
      %13 = vector.load %arg6[%c0_6, %c0_7] : memref<8x16xf32, #tpu.memory_space<vmem>>, vector<8x16xf32>
      tpu.vector_store %arg6[%c0_6, %c0_7], %12 {strides = array<i32>} : memref<8x16xf32, #tpu.memory_space<vmem>>, vector<8x16xf32>,
      %cst_8 = arith.constant 0.000000e+00 : f32
      %14 = vector.broadcast %cst_8 : f32 to vector<8x16xf32>
      %c0_9 = arith.constant 0 : index
      %c0_10 = arith.constant 0 : index
      %15 = vector.load %arg7[%c0_9, %c0_10] : memref<8x16xf32, #tpu.memory_space<vmem>>, vector<8x16xf32>
      tpu.vector_store %arg7[%c0_9, %c0_10], %14 {strides = array<i32>} : memref<8x16xf32, #tpu.memory_space<vmem>>, vector<8x16xf32>,
    } else {
    }
    %c0_i32_3 = arith.constant 0 : i32
    %6 = arith.cmpi eq, %arg1, %c0_i32_3 : i32
    %7 = arith.extui %6 : i1 to i32
    %c0_i32_4 = arith.constant 0 : i32
    %8 = arith.cmpi ne, %7, %c0_i32_4 : i32
    scf.if %8 {
      %c0_6 = arith.constant 0 : index
      %c0_7 = arith.constant 0 : index
      %12 = vector.load %arg6[%c0_6, %c0_7] : memref<8x16xf32, #tpu.memory_space<vmem>>, vector<8x16xf32>
      %c0_8 = arith.constant 0 : index
      %c0_9 = arith.constant 0 : index
      %13 = vector.load %arg7[%c0_8, %c0_9] : memref<8x16xf32, #tpu.memory_space<vmem>>, vector<8x16xf32>
      %c8_i32 = arith.constant 8 : i32
      %14 = arith.muli %arg2, %c8_i32 : i32
      %c0_i32_10 = arith.constant 0 : i32
      %15 = arith.addi %14, %c0_i32_10 : i32
      %c24_i32 = arith.constant 24 : i32
      %16 = arith.muli %15, %c24_i32 : i32
      %17 = tpu.assume_multiple %16, 8 : i32
      %c0_11 = arith.constant 0 : index
      %18 = arith.index_cast %17 : i32 to index
      %c0_12 = arith.constant 0 : index
      %19 = vector.load %arg3[%c0_11, %18, %c0_12] : memref<1x528x16xf32, #tpu.memory_space<vmem>>, vector<1x168x16xf32>
      %20 = vector.shape_cast %19 : vector<1x168x16xf32> to vector<168x16xf32>
      %cst = arith.constant dense<0.000000e+00> : vector<8x16xf32>
      %21 = tpu.matmul %0, %20, %cst {dimension_numbers = #tpu.dot_dimension_numbers<[1], [0], [0], [1], [0, 0, 1, 1], [], []>} : vector<8x168xf32>, vector<168x16xf32>, vector<8x16xf32> -> vector<8x16xf32>
      %22 = arith.addf %12, %21 : vector<8x16xf32>
      %23 = arith.mulf %21, %21 : vector<8x16xf32>
      %24 = arith.addf %13, %23 : vector<8x16xf32>
      %c8_i32_13 = arith.constant 8 : i32
      %25 = arith.muli %arg2, %c8_i32_13 : i32
      %c1_i32_14 = arith.constant 1 : i32
      %26 = arith.addi %25, %c1_i32_14 : i32
      %c24_i32_15 = arith.constant 24 : i32
      %27 = arith.muli %26, %c24_i32_15 : i32
      %28 = tpu.assume_multiple %27, 8 : i32
      %c0_16 = arith.constant 0 : index
      %29 = arith.index_cast %28 : i32 to index
      %c0_17 = arith.constant 0 : index
      %30 = vector.load %arg3[%c0_16, %29, %c0_17] : memref<1x528x16xf32, #tpu.memory_space<vmem>>, vector<1x168x16xf32>
      %31 = vector.shape_cast %30 : vector<1x168x16xf32> to vector<168x16xf32>
      %cst_18 = arith.constant dense<0.000000e+00> : vector<8x16xf32>
      %32 = tpu.matmul %0, %31, %cst_18 {dimension_numbers = #tpu.dot_dimension_numbers<[1], [0], [0], [1], [0, 0, 1, 1], [], []>} : vector<8x168xf32>, vector<168x16xf32>, vector<8x16xf32> -> vector<8x16xf32>
      %33 = arith.addf %22, %32 : vector<8x16xf32>
      %34 = arith.mulf %32, %32 : vector<8x16xf32>
      %35 = arith.addf %24, %34 : vector<8x16xf32>
      %c8_i32_19 = arith.constant 8 : i32
      %36 = arith.muli %arg2, %c8_i32_19 : i32
      %c2_i32 = arith.constant 2 : i32
      %37 = arith.addi %36, %c2_i32 : i32
      %c24_i32_20 = arith.constant 24 : i32
      %38 = arith.muli %37, %c24_i32_20 : i32
      %39 = tpu.assume_multiple %38, 8 : i32
      %c0_21 = arith.constant 0 : index
      %40 = arith.index_cast %39 : i32 to index
      %c0_22 = arith.constant 0 : index
      %41 = vector.load %arg3[%c0_21, %40, %c0_22] : memref<1x528x16xf32, #tpu.memory_space<vmem>>, vector<1x168x16xf32>
      %42 = vector.shape_cast %41 : vector<1x168x16xf32> to vector<168x16xf32>
      %cst_23 = arith.constant dense<0.000000e+00> : vector<8x16xf32>
      %43 = tpu.matmul %0, %42, %cst_23 {dimension_numbers = #tpu.dot_dimension_numbers<[1], [0], [0], [1], [0, 0, 1, 1], [], []>} : vector<8x168xf32>, vector<168x16xf32>, vector<8x16xf32> -> vector<8x16xf32>
      %44 = arith.addf %33, %43 : vector<8x16xf32>
      %45 = arith.mulf %43, %43 : vector<8x16xf32>
      %46 = arith.addf %35, %45 : vector<8x16xf32>
      %c8_i32_24 = arith.constant 8 : i32
      %47 = arith.muli %arg2, %c8_i32_24 : i32
      %c3_i32 = arith.constant 3 : i32
      %48 = arith.addi %47, %c3_i32 : i32
      %c24_i32_25 = arith.constant 24 : i32
      %49 = arith.muli %48, %c24_i32_25 : i32
      %50 = tpu.assume_multiple %49, 8 : i32
      %c0_26 = arith.constant 0 : index
      %51 = arith.index_cast %50 : i32 to index
      %c0_27 = arith.constant 0 : index
      %52 = vector.load %arg3[%c0_26, %51, %c0_27] : memref<1x528x16xf32, #tpu.memory_space<vmem>>, vector<1x168x16xf32>
      %53 = vector.shape_cast %52 : vector<1x168x16xf32> to vector<168x16xf32>
      %cst_28 = arith.constant dense<0.000000e+00> : vector<8x16xf32>
      %54 = tpu.matmul %0, %53, %cst_28 {dimension_numbers = #tpu.dot_dimension_numbers<[1], [0], [0], [1], [0, 0, 1, 1], [], []>} : vector<8x168xf32>, vector<168x16xf32>, vector<8x16xf32> -> vector<8x16xf32>
      %55 = arith.addf %44, %54 : vector<8x16xf32>
      %56 = arith.mulf %54, %54 : vector<8x16xf32>
      %57 = arith.addf %46, %56 : vector<8x16xf32>
      %c8_i32_29 = arith.constant 8 : i32
      %58 = arith.muli %arg2, %c8_i32_29 : i32
      %c4_i32 = arith.constant 4 : i32
      %59 = arith.addi %58, %c4_i32 : i32
      %c24_i32_30 = arith.constant 24 : i32
      %60 = arith.muli %59, %c24_i32_30 : i32
      %61 = tpu.assume_multiple %60, 8 : i32
      %c0_31 = arith.constant 0 : index
      %62 = arith.index_cast %61 : i32 to index
      %c0_32 = arith.constant 0 : index
      %63 = vector.load %arg3[%c0_31, %62, %c0_32] : memref<1x528x16xf32, #tpu.memory_space<vmem>>, vector<1x168x16xf32>
      %64 = vector.shape_cast %63 : vector<1x168x16xf32> to vector<168x16xf32>
      %cst_33 = arith.constant dense<0.000000e+00> : vector<8x16xf32>
      %65 = tpu.matmul %0, %64, %cst_33 {dimension_numbers = #tpu.dot_dimension_numbers<[1], [0], [0], [1], [0, 0, 1, 1], [], []>} : vector<8x168xf32>, vector<168x16xf32>, vector<8x16xf32> -> vector<8x16xf32>
      %66 = arith.addf %55, %65 : vector<8x16xf32>
      %67 = arith.mulf %65, %65 : vector<8x16xf32>
      %68 = arith.addf %57, %67 : vector<8x16xf32>
      %c8_i32_34 = arith.constant 8 : i32
      %69 = arith.muli %arg2, %c8_i32_34 : i32
      %c5_i32 = arith.constant 5 : i32
      %70 = arith.addi %69, %c5_i32 : i32
      %c24_i32_35 = arith.constant 24 : i32
      %71 = arith.muli %70, %c24_i32_35 : i32
      %72 = tpu.assume_multiple %71, 8 : i32
      %c0_36 = arith.constant 0 : index
      %73 = arith.index_cast %72 : i32 to index
      %c0_37 = arith.constant 0 : index
      %74 = vector.load %arg3[%c0_36, %73, %c0_37] : memref<1x528x16xf32, #tpu.memory_space<vmem>>, vector<1x168x16xf32>
      %75 = vector.shape_cast %74 : vector<1x168x16xf32> to vector<168x16xf32>
      %cst_38 = arith.constant dense<0.000000e+00> : vector<8x16xf32>
      %76 = tpu.matmul %0, %75, %cst_38 {dimension_numbers = #tpu.dot_dimension_numbers<[1], [0], [0], [1], [0, 0, 1, 1], [], []>} : vector<8x168xf32>, vector<168x16xf32>, vector<8x16xf32> -> vector<8x16xf32>
      %77 = arith.addf %66, %76 : vector<8x16xf32>
      %78 = arith.mulf %76, %76 : vector<8x16xf32>
      %79 = arith.addf %68, %78 : vector<8x16xf32>
      %c8_i32_39 = arith.constant 8 : i32
      %80 = arith.muli %arg2, %c8_i32_39 : i32
      %c6_i32 = arith.constant 6 : i32
      %81 = arith.addi %80, %c6_i32 : i32
      %c24_i32_40 = arith.constant 24 : i32
      %82 = arith.muli %81, %c24_i32_40 : i32
      %83 = tpu.assume_multiple %82, 8 : i32
      %c0_41 = arith.constant 0 : index
      %84 = arith.index_cast %83 : i32 to index
      %c0_42 = arith.constant 0 : index
      %85 = vector.load %arg3[%c0_41, %84, %c0_42] : memref<1x528x16xf32, #tpu.memory_space<vmem>>, vector<1x168x16xf32>
      %86 = vector.shape_cast %85 : vector<1x168x16xf32> to vector<168x16xf32>
      %cst_43 = arith.constant dense<0.000000e+00> : vector<8x16xf32>
      %87 = tpu.matmul %0, %86, %cst_43 {dimension_numbers = #tpu.dot_dimension_numbers<[1], [0], [0], [1], [0, 0, 1, 1], [], []>} : vector<8x168xf32>, vector<168x16xf32>, vector<8x16xf32> -> vector<8x16xf32>
      %88 = arith.addf %77, %87 : vector<8x16xf32>
      %89 = arith.mulf %87, %87 : vector<8x16xf32>
      %90 = arith.addf %79, %89 : vector<8x16xf32>
      %c8_i32_44 = arith.constant 8 : i32
      %91 = arith.muli %arg2, %c8_i32_44 : i32
      %c7_i32 = arith.constant 7 : i32
      %92 = arith.addi %91, %c7_i32 : i32
      %c24_i32_45 = arith.constant 24 : i32
      %93 = arith.muli %92, %c24_i32_45 : i32
      %94 = tpu.assume_multiple %93, 8 : i32
      %c0_46 = arith.constant 0 : index
      %95 = arith.index_cast %94 : i32 to index
      %c0_47 = arith.constant 0 : index
      %96 = vector.load %arg3[%c0_46, %95, %c0_47] : memref<1x528x16xf32, #tpu.memory_space<vmem>>, vector<1x168x16xf32>
      %97 = vector.shape_cast %96 : vector<1x168x16xf32> to vector<168x16xf32>
      %cst_48 = arith.constant dense<0.000000e+00> : vector<8x16xf32>
      %98 = tpu.matmul %0, %97, %cst_48 {dimension_numbers = #tpu.dot_dimension_numbers<[1], [0], [0], [1], [0, 0, 1, 1], [], []>} : vector<8x168xf32>, vector<168x16xf32>, vector<8x16xf32> -> vector<8x16xf32>
      %99 = arith.addf %88, %98 : vector<8x16xf32>
      %100 = arith.mulf %98, %98 : vector<8x16xf32>
      %101 = arith.addf %90, %100 : vector<8x16xf32>
      %c0_49 = arith.constant 0 : index
      %c0_50 = arith.constant 0 : index
      %102 = vector.load %arg6[%c0_49, %c0_50] : memref<8x16xf32, #tpu.memory_space<vmem>>, vector<8x16xf32>
      tpu.vector_store %arg6[%c0_49, %c0_50], %99 {strides = array<i32>} : memref<8x16xf32, #tpu.memory_space<vmem>>, vector<8x16xf32>,
      %c0_51 = arith.constant 0 : index
      %c0_52 = arith.constant 0 : index
      %103 = vector.load %arg7[%c0_51, %c0_52] : memref<8x16xf32, #tpu.memory_space<vmem>>, vector<8x16xf32>
      tpu.vector_store %arg7[%c0_51, %c0_52], %101 {strides = array<i32>} : memref<8x16xf32, #tpu.memory_space<vmem>>, vector<8x16xf32>,
    } else {
    }
    %c1_i32 = arith.constant 1 : i32
    %9 = arith.cmpi eq, %arg1, %c1_i32 : i32
    %10 = arith.extui %9 : i1 to i32
    %c0_i32_5 = arith.constant 0 : i32
    %11 = arith.cmpi ne, %10, %c0_i32_5 : i32
    scf.if %11 {
      %c0_6 = arith.constant 0 : index
      %c0_7 = arith.constant 0 : index
      %12 = vector.load %arg6[%c0_6, %c0_7] : memref<8x16xf32, #tpu.memory_space<vmem>>, vector<8x16xf32>
      %cst = arith.constant dense<0.000000e+00> : vector<8xf32>
      %13 = vector.multi_reduction <add>, %12, %cst [1] : vector<8x16xf32> to vector<8xf32>
      %14 = vector.shape_cast %13 : vector<8xf32> to vector<8x1xf32>
      %cst_8 = arith.constant 3.906250e-03 : f32
      %15 = vector.broadcast %cst_8 : f32 to vector<8x1xf32>
      %16 = arith.mulf %14, %15 : vector<8x1xf32>
      %c0_9 = arith.constant 0 : index
      %c0_10 = arith.constant 0 : index
      %17 = vector.load %arg7[%c0_9, %c0_10] : memref<8x16xf32, #tpu.memory_space<vmem>>, vector<8x16xf32>
      %cst_11 = arith.constant dense<0.000000e+00> : vector<8xf32>
      %18 = vector.multi_reduction <add>, %17, %cst_11 [1] : vector<8x16xf32> to vector<8xf32>
      %19 = vector.shape_cast %18 : vector<8xf32> to vector<8x1xf32>
      %cst_12 = arith.constant 3.906250e-03 : f32
      %20 = vector.broadcast %cst_12 : f32 to vector<8x1xf32>
      %21 = arith.mulf %19, %20 : vector<8x1xf32>
      %22 = arith.mulf %16, %16 : vector<8x1xf32>
      %23 = arith.subf %21, %22 : vector<8x1xf32>
      %cst_13 = arith.constant 0.000000e+00 : f32
      %24 = vector.broadcast %cst_13 : f32 to vector<8x1xf32>
      %25 = arith.maximumf %23, %24 : vector<8x1xf32>
      %cst_14 = arith.constant 9.99999974E-6 : f32
      %26 = vector.broadcast %cst_14 : f32 to vector<8x1xf32>
      %27 = arith.addf %25, %26 : vector<8x1xf32>
      %28 = math.rsqrt %27 : vector<8x1xf32>
      %c8_i32 = arith.constant 8 : i32
      %29 = arith.muli %arg2, %c8_i32 : i32
      %c0_i32_15 = arith.constant 0 : i32
      %30 = arith.addi %29, %c0_i32_15 : i32
      %c24_i32 = arith.constant 24 : i32
      %31 = arith.muli %30, %c24_i32 : i32
      %32 = tpu.assume_multiple %31, 8 : i32
      %c0_16 = arith.constant 0 : index
      %33 = arith.index_cast %32 : i32 to index
      %c0_17 = arith.constant 0 : index
      %34 = vector.load %arg3[%c0_16, %33, %c0_17] : memref<1x528x16xf32, #tpu.memory_space<vmem>>, vector<1x168x16xf32>
      %35 = vector.shape_cast %34 : vector<1x168x16xf32> to vector<168x16xf32>
      %cst_18 = arith.constant dense<0.000000e+00> : vector<8x16xf32>
      %36 = tpu.matmul %0, %35, %cst_18 {dimension_numbers = #tpu.dot_dimension_numbers<[1], [0], [0], [1], [0, 0, 1, 1], [], []>} : vector<8x168xf32>, vector<168x16xf32>, vector<8x16xf32> -> vector<8x16xf32>
      %37 = vector.broadcast %16 : vector<8x1xf32> to vector<8x16xf32>
      %38 = arith.subf %36, %37 : vector<8x16xf32>
      %39 = vector.broadcast %28 : vector<8x1xf32> to vector<8x16xf32>
      %40 = arith.mulf %38, %39 : vector<8x16xf32>
      %cst_19 = arith.constant 0.000000e+00 : f32
      %41 = vector.broadcast %cst_19 : f32 to vector<8x16xf32>
      %42 = arith.maximumf %40, %41 : vector<8x16xf32>
      %c0_20 = arith.constant 0 : index
      %c0_21 = arith.constant 0 : index
      %c0_22 = arith.constant 0 : index
      %43 = vector.load %arg5[%c0_20, %c0_21, %c0_22] : memref<1x8x128xf32, #tpu.memory_space<vmem>>, vector<1x8x16xf32>
      %44 = vector.shape_cast %43 : vector<1x8x16xf32> to vector<8x16xf32>
      %45 = vector.shape_cast %42 : vector<8x16xf32> to vector<1x8x16xf32>
      tpu.vector_store %arg5[%c0_20, %c0_21, %c0_22], %45 {strides = array<i32>} : memref<1x8x128xf32, #tpu.memory_space<vmem>>, vector<1x8x16xf32>,
      %c8_i32_23 = arith.constant 8 : i32
      %46 = arith.muli %arg2, %c8_i32_23 : i32
      %c1_i32_24 = arith.constant 1 : i32
      %47 = arith.addi %46, %c1_i32_24 : i32
      %c24_i32_25 = arith.constant 24 : i32
      %48 = arith.muli %47, %c24_i32_25 : i32
      %49 = tpu.assume_multiple %48, 8 : i32
      %c0_26 = arith.constant 0 : index
      %50 = arith.index_cast %49 : i32 to index
      %c0_27 = arith.constant 0 : index
      %51 = vector.load %arg3[%c0_26, %50, %c0_27] : memref<1x528x16xf32, #tpu.memory_space<vmem>>, vector<1x168x16xf32>
      %52 = vector.shape_cast %51 : vector<1x168x16xf32> to vector<168x16xf32>
      %cst_28 = arith.constant dense<0.000000e+00> : vector<8x16xf32>
      %53 = tpu.matmul %0, %52, %cst_28 {dimension_numbers = #tpu.dot_dimension_numbers<[1], [0], [0], [1], [0, 0, 1, 1], [], []>} : vector<8x168xf32>, vector<168x16xf32>, vector<8x16xf32> -> vector<8x16xf32>
      %54 = vector.broadcast %16 : vector<8x1xf32> to vector<8x16xf32>
      %55 = arith.subf %53, %54 : vector<8x16xf32>
      %56 = vector.broadcast %28 : vector<8x1xf32> to vector<8x16xf32>
      %57 = arith.mulf %55, %56 : vector<8x16xf32>
      %cst_29 = arith.constant 0.000000e+00 : f32
      %58 = vector.broadcast %cst_29 : f32 to vector<8x16xf32>
      %59 = arith.maximumf %57, %58 : vector<8x16xf32>
      %c0_30 = arith.constant 0 : index
      %c0_31 = arith.constant 0 : index
      %c16 = arith.constant 16 : index
      %60 = vector.load %arg5[%c0_30, %c0_31, %c16] : memref<1x8x128xf32, #tpu.memory_space<vmem>>, vector<1x8x16xf32>
      %61 = vector.shape_cast %60 : vector<1x8x16xf32> to vector<8x16xf32>
      %62 = vector.shape_cast %59 : vector<8x16xf32> to vector<1x8x16xf32>
      tpu.vector_store %arg5[%c0_30, %c0_31, %c16], %62 {strides = array<i32>} : memref<1x8x128xf32, #tpu.memory_space<vmem>>, vector<1x8x16xf32>,
      %c8_i32_32 = arith.constant 8 : i32
      %63 = arith.muli %arg2, %c8_i32_32 : i32
      %c2_i32 = arith.constant 2 : i32
      %64 = arith.addi %63, %c2_i32 : i32
      %c24_i32_33 = arith.constant 24 : i32
      %65 = arith.muli %64, %c24_i32_33 : i32
      %66 = tpu.assume_multiple %65, 8 : i32
      %c0_34 = arith.constant 0 : index
      %67 = arith.index_cast %66 : i32 to index
      %c0_35 = arith.constant 0 : index
      %68 = vector.load %arg3[%c0_34, %67, %c0_35] : memref<1x528x16xf32, #tpu.memory_space<vmem>>, vector<1x168x16xf32>
      %69 = vector.shape_cast %68 : vector<1x168x16xf32> to vector<168x16xf32>
      %cst_36 = arith.constant dense<0.000000e+00> : vector<8x16xf32>
      %70 = tpu.matmul %0, %69, %cst_36 {dimension_numbers = #tpu.dot_dimension_numbers<[1], [0], [0], [1], [0, 0, 1, 1], [], []>} : vector<8x168xf32>, vector<168x16xf32>, vector<8x16xf32> -> vector<8x16xf32>
      %71 = vector.broadcast %16 : vector<8x1xf32> to vector<8x16xf32>
      %72 = arith.subf %70, %71 : vector<8x16xf32>
      %73 = vector.broadcast %28 : vector<8x1xf32> to vector<8x16xf32>
      %74 = arith.mulf %72, %73 : vector<8x16xf32>
      %cst_37 = arith.constant 0.000000e+00 : f32
      %75 = vector.broadcast %cst_37 : f32 to vector<8x16xf32>
      %76 = arith.maximumf %74, %75 : vector<8x16xf32>
      %c0_38 = arith.constant 0 : index
      %c0_39 = arith.constant 0 : index
      %c32 = arith.constant 32 : index
      %77 = vector.load %arg5[%c0_38, %c0_39, %c32] : memref<1x8x128xf32, #tpu.memory_space<vmem>>, vector<1x8x16xf32>
      %78 = vector.shape_cast %77 : vector<1x8x16xf32> to vector<8x16xf32>
      %79 = vector.shape_cast %76 : vector<8x16xf32> to vector<1x8x16xf32>
      tpu.vector_store %arg5[%c0_38, %c0_39, %c32], %79 {strides = array<i32>} : memref<1x8x128xf32, #tpu.memory_space<vmem>>, vector<1x8x16xf32>,
      %c8_i32_40 = arith.constant 8 : i32
      %80 = arith.muli %arg2, %c8_i32_40 : i32
      %c3_i32 = arith.constant 3 : i32
      %81 = arith.addi %80, %c3_i32 : i32
      %c24_i32_41 = arith.constant 24 : i32
      %82 = arith.muli %81, %c24_i32_41 : i32
      %83 = tpu.assume_multiple %82, 8 : i32
      %c0_42 = arith.constant 0 : index
      %84 = arith.index_cast %83 : i32 to index
      %c0_43 = arith.constant 0 : index
      %85 = vector.load %arg3[%c0_42, %84, %c0_43] : memref<1x528x16xf32, #tpu.memory_space<vmem>>, vector<1x168x16xf32>
      %86 = vector.shape_cast %85 : vector<1x168x16xf32> to vector<168x16xf32>
      %cst_44 = arith.constant dense<0.000000e+00> : vector<8x16xf32>
      %87 = tpu.matmul %0, %86, %cst_44 {dimension_numbers = #tpu.dot_dimension_numbers<[1], [0], [0], [1], [0, 0, 1, 1], [], []>} : vector<8x168xf32>, vector<168x16xf32>, vector<8x16xf32> -> vector<8x16xf32>
      %88 = vector.broadcast %16 : vector<8x1xf32> to vector<8x16xf32>
      %89 = arith.subf %87, %88 : vector<8x16xf32>
      %90 = vector.broadcast %28 : vector<8x1xf32> to vector<8x16xf32>
      %91 = arith.mulf %89, %90 : vector<8x16xf32>
      %cst_45 = arith.constant 0.000000e+00 : f32
      %92 = vector.broadcast %cst_45 : f32 to vector<8x16xf32>
      %93 = arith.maximumf %91, %92 : vector<8x16xf32>
      %c0_46 = arith.constant 0 : index
      %c0_47 = arith.constant 0 : index
      %c48 = arith.constant 48 : index
      %94 = vector.load %arg5[%c0_46, %c0_47, %c48] : memref<1x8x128xf32, #tpu.memory_space<vmem>>, vector<1x8x16xf32>
      %95 = vector.shape_cast %94 : vector<1x8x16xf32> to vector<8x16xf32>
      %96 = vector.shape_cast %93 : vector<8x16xf32> to vector<1x8x16xf32>
      tpu.vector_store %arg5[%c0_46, %c0_47, %c48], %96 {strides = array<i32>} : memref<1x8x128xf32, #tpu.memory_space<vmem>>, vector<1x8x16xf32>,
      %c8_i32_48 = arith.constant 8 : i32
      %97 = arith.muli %arg2, %c8_i32_48 : i32
      %c4_i32 = arith.constant 4 : i32
      %98 = arith.addi %97, %c4_i32 : i32
      %c24_i32_49 = arith.constant 24 : i32
      %99 = arith.muli %98, %c24_i32_49 : i32
      %100 = tpu.assume_multiple %99, 8 : i32
      %c0_50 = arith.constant 0 : index
      %101 = arith.index_cast %100 : i32 to index
      %c0_51 = arith.constant 0 : index
      %102 = vector.load %arg3[%c0_50, %101, %c0_51] : memref<1x528x16xf32, #tpu.memory_space<vmem>>, vector<1x168x16xf32>
      %103 = vector.shape_cast %102 : vector<1x168x16xf32> to vector<168x16xf32>
      %cst_52 = arith.constant dense<0.000000e+00> : vector<8x16xf32>
      %104 = tpu.matmul %0, %103, %cst_52 {dimension_numbers = #tpu.dot_dimension_numbers<[1], [0], [0], [1], [0, 0, 1, 1], [], []>} : vector<8x168xf32>, vector<168x16xf32>, vector<8x16xf32> -> vector<8x16xf32>
      %105 = vector.broadcast %16 : vector<8x1xf32> to vector<8x16xf32>
      %106 = arith.subf %104, %105 : vector<8x16xf32>
      %107 = vector.broadcast %28 : vector<8x1xf32> to vector<8x16xf32>
      %108 = arith.mulf %106, %107 : vector<8x16xf32>
      %cst_53 = arith.constant 0.000000e+00 : f32
      %109 = vector.broadcast %cst_53 : f32 to vector<8x16xf32>
      %110 = arith.maximumf %108, %109 : vector<8x16xf32>
      %c0_54 = arith.constant 0 : index
      %c0_55 = arith.constant 0 : index
      %c64 = arith.constant 64 : index
      %111 = vector.load %arg5[%c0_54, %c0_55, %c64] : memref<1x8x128xf32, #tpu.memory_space<vmem>>, vector<1x8x16xf32>
      %112 = vector.shape_cast %111 : vector<1x8x16xf32> to vector<8x16xf32>
      %113 = vector.shape_cast %110 : vector<8x16xf32> to vector<1x8x16xf32>
      tpu.vector_store %arg5[%c0_54, %c0_55, %c64], %113 {strides = array<i32>} : memref<1x8x128xf32, #tpu.memory_space<vmem>>, vector<1x8x16xf32>,
      %c8_i32_56 = arith.constant 8 : i32
      %114 = arith.muli %arg2, %c8_i32_56 : i32
      %c5_i32 = arith.constant 5 : i32
      %115 = arith.addi %114, %c5_i32 : i32
      %c24_i32_57 = arith.constant 24 : i32
      %116 = arith.muli %115, %c24_i32_57 : i32
      %117 = tpu.assume_multiple %116, 8 : i32
      %c0_58 = arith.constant 0 : index
      %118 = arith.index_cast %117 : i32 to index
      %c0_59 = arith.constant 0 : index
      %119 = vector.load %arg3[%c0_58, %118, %c0_59] : memref<1x528x16xf32, #tpu.memory_space<vmem>>, vector<1x168x16xf32>
      %120 = vector.shape_cast %119 : vector<1x168x16xf32> to vector<168x16xf32>
      %cst_60 = arith.constant dense<0.000000e+00> : vector<8x16xf32>
      %121 = tpu.matmul %0, %120, %cst_60 {dimension_numbers = #tpu.dot_dimension_numbers<[1], [0], [0], [1], [0, 0, 1, 1], [], []>} : vector<8x168xf32>, vector<168x16xf32>, vector<8x16xf32> -> vector<8x16xf32>
      %122 = vector.broadcast %16 : vector<8x1xf32> to vector<8x16xf32>
      %123 = arith.subf %121, %122 : vector<8x16xf32>
      %124 = vector.broadcast %28 : vector<8x1xf32> to vector<8x16xf32>
      %125 = arith.mulf %123, %124 : vector<8x16xf32>
      %cst_61 = arith.constant 0.000000e+00 : f32
      %126 = vector.broadcast %cst_61 : f32 to vector<8x16xf32>
      %127 = arith.maximumf %125, %126 : vector<8x16xf32>
      %c0_62 = arith.constant 0 : index
      %c0_63 = arith.constant 0 : index
      %c80 = arith.constant 80 : index
      %128 = vector.load %arg5[%c0_62, %c0_63, %c80] : memref<1x8x128xf32, #tpu.memory_space<vmem>>, vector<1x8x16xf32>
      %129 = vector.shape_cast %128 : vector<1x8x16xf32> to vector<8x16xf32>
      %130 = vector.shape_cast %127 : vector<8x16xf32> to vector<1x8x16xf32>
      tpu.vector_store %arg5[%c0_62, %c0_63, %c80], %130 {strides = array<i32>} : memref<1x8x128xf32, #tpu.memory_space<vmem>>, vector<1x8x16xf32>,
      %c8_i32_64 = arith.constant 8 : i32
      %131 = arith.muli %arg2, %c8_i32_64 : i32
      %c6_i32 = arith.constant 6 : i32
      %132 = arith.addi %131, %c6_i32 : i32
      %c24_i32_65 = arith.constant 24 : i32
      %133 = arith.muli %132, %c24_i32_65 : i32
      %134 = tpu.assume_multiple %133, 8 : i32
      %c0_66 = arith.constant 0 : index
      %135 = arith.index_cast %134 : i32 to index
      %c0_67 = arith.constant 0 : index
      %136 = vector.load %arg3[%c0_66, %135, %c0_67] : memref<1x528x16xf32, #tpu.memory_space<vmem>>, vector<1x168x16xf32>
      %137 = vector.shape_cast %136 : vector<1x168x16xf32> to vector<168x16xf32>
      %cst_68 = arith.constant dense<0.000000e+00> : vector<8x16xf32>
      %138 = tpu.matmul %0, %137, %cst_68 {dimension_numbers = #tpu.dot_dimension_numbers<[1], [0], [0], [1], [0, 0, 1, 1], [], []>} : vector<8x168xf32>, vector<168x16xf32>, vector<8x16xf32> -> vector<8x16xf32>
      %139 = vector.broadcast %16 : vector<8x1xf32> to vector<8x16xf32>
      %140 = arith.subf %138, %139 : vector<8x16xf32>
      %141 = vector.broadcast %28 : vector<8x1xf32> to vector<8x16xf32>
      %142 = arith.mulf %140, %141 : vector<8x16xf32>
      %cst_69 = arith.constant 0.000000e+00 : f32
      %143 = vector.broadcast %cst_69 : f32 to vector<8x16xf32>
      %144 = arith.maximumf %142, %143 : vector<8x16xf32>
      %c0_70 = arith.constant 0 : index
      %c0_71 = arith.constant 0 : index
      %c96 = arith.constant 96 : index
      %145 = vector.load %arg5[%c0_70, %c0_71, %c96] : memref<1x8x128xf32, #tpu.memory_space<vmem>>, vector<1x8x16xf32>
      %146 = vector.shape_cast %145 : vector<1x8x16xf32> to vector<8x16xf32>
      %147 = vector.shape_cast %144 : vector<8x16xf32> to vector<1x8x16xf32>
      tpu.vector_store %arg5[%c0_70, %c0_71, %c96], %147 {strides = array<i32>} : memref<1x8x128xf32, #tpu.memory_space<vmem>>, vector<1x8x16xf32>,
      %c8_i32_72 = arith.constant 8 : i32
      %148 = arith.muli %arg2, %c8_i32_72 : i32
      %c7_i32 = arith.constant 7 : i32
      %149 = arith.addi %148, %c7_i32 : i32
      %c24_i32_73 = arith.constant 24 : i32
      %150 = arith.muli %149, %c24_i32_73 : i32
      %151 = tpu.assume_multiple %150, 8 : i32
      %c0_74 = arith.constant 0 : index
      %152 = arith.index_cast %151 : i32 to index
      %c0_75 = arith.constant 0 : index
      %153 = vector.load %arg3[%c0_74, %152, %c0_75] : memref<1x528x16xf32, #tpu.memory_space<vmem>>, vector<1x168x16xf32>
      %154 = vector.shape_cast %153 : vector<1x168x16xf32> to vector<168x16xf32>
      %cst_76 = arith.constant dense<0.000000e+00> : vector<8x16xf32>
      %155 = tpu.matmul %0, %154, %cst_76 {dimension_numbers = #tpu.dot_dimension_numbers<[1], [0], [0], [1], [0, 0, 1, 1], [], []>} : vector<8x168xf32>, vector<168x16xf32>, vector<8x16xf32> -> vector<8x16xf32>
      %156 = vector.broadcast %16 : vector<8x1xf32> to vector<8x16xf32>
      %157 = arith.subf %155, %156 : vector<8x16xf32>
      %158 = vector.broadcast %28 : vector<8x1xf32> to vector<8x16xf32>
      %159 = arith.mulf %157, %158 : vector<8x16xf32>
      %cst_77 = arith.constant 0.000000e+00 : f32
      %160 = vector.broadcast %cst_77 : f32 to vector<8x16xf32>
      %161 = arith.maximumf %159, %160 : vector<8x16xf32>
      %c0_78 = arith.constant 0 : index
      %c0_79 = arith.constant 0 : index
      %c112 = arith.constant 112 : index
      %162 = vector.load %arg5[%c0_78, %c0_79, %c112] : memref<1x8x128xf32, #tpu.memory_space<vmem>>, vector<1x8x16xf32>
      %163 = vector.shape_cast %162 : vector<1x8x16xf32> to vector<8x16xf32>
      %164 = vector.shape_cast %161 : vector<8x16xf32> to vector<1x8x16xf32>
      tpu.vector_store %arg5[%c0_78, %c0_79, %c112], %164 {strides = array<i32>} : memref<1x8x128xf32, #tpu.memory_space<vmem>>, vector<1x8x16xf32>,
    } else {
    }
    return
  }
  func.func @transform_0(%arg0: i32, %arg1: i32, %arg2: i32) -> (i32, i32, i32) {
    %c0_i32 = arith.constant 0 : i32
    %c0_i32_0 = arith.constant 0 : i32
    %c0_i32_1 = arith.constant 0 : i32
    return %arg0, %c0_i32, %c0_i32_0 : i32, i32, i32
  }
  func.func @transform_1(%arg0: i32, %arg1: i32, %arg2: i32) -> (i32, i32) {
    %c0_i32 = arith.constant 0 : i32
    %c0_i32_0 = arith.constant 0 : i32
    %c0_i32_1 = arith.constant 0 : i32
    return %c0_i32, %c0_i32_0 : i32, i32
  }
  func.func @transform_2(%arg0: i32, %arg1: i32, %arg2: i32) -> (i32, i32, i32) {
    %0 = arith.muli %arg1, %arg2 : i32
    %c0_i32 = arith.constant 0 : i32
    %c0_i32_0 = arith.constant 0 : i32
    return %arg0, %c0_i32, %0 : i32, i32, i32
  }
}

</mosaic_0001>

<bundles_post_ra>
// kernel: tpu_custom_call.1
= control target key start
LH: loop header
LB: loop body
LE: loop exit
PB: predicated region body
PF: predicated region fallthrough
CT: control target
= control target key end

     0   :  { %7 = vsyncpa [#allocation5], 0  ;;  %s3698_s0 = inlined_call_operand.vmem [shape: f32[2,528,16], index: 0, kind: input, shape index: {}]   ;;  %s3699_s1 = inlined_call_operand.vmem [shape: f32[8,168], index: 1, kind: input, shape index: {}]   ;;  %s3700_s2 = inlined_call_operand.hbm [shape: f32[2,8,256], index: 2, kind: output, shape index: {}]  }
   0x1   :  { %9 = vsyncpa [#allocation5 + $0x1], 0  ;;  %s3037_s9 = smov 0   ;;  %s3039_s10 = smov 0  }
   0x2   :  { %s3041_s11 = smov 0   ;;  %s3043_s12 = smov 0  }
   0x3   :  { %s3045_s13 = smov 0   ;;  %s3047_s14 = smov 0  }
   0x4   :  { %s3049_s15 = smov 0   ;;  %s3051_s16 = smov 0  }
   0x5   :  { %s3053_s17 = smov 0   ;;  %s3055_s18 = smov 0  }
   0x6 LB: > { %s1963_s19 = sadd.s32 4294967295, %s3007_s18   ;;  %s1964_s20 = sadd.s32 4294967294, %s3007_s18   ;;  %s3007_s18 = sphi %s3055_s18, %s15_s18   ;;  %s3003_s17 = sphi %s3053_s17, %s3711_s17   ;;  %s2999_s16 = sphi %s3051_s16, %s3710_s16   ;;  %s2995_s15 = sphi %s3049_s15, %s3709_s15   ;;  %s2991_s14 = sphi %s3047_s14, %s3708_s14   ;;  %s2987_s13 = sphi %s3045_s13, %s3707_s13   ;;  %s2983_s12 = sphi %s3043_s12, %s3706_s12   ;;  %s2979_s11 = sphi %s3041_s11, %s3705_s11   ;;  %s2975_s10 = sphi %s3039_s10, %s3704_s10   ;;  %s2971_s9 = sphi %s3037_s9, %s3703_s9  }
   0x7   : > { %s27_s21 = sadd.s32 1, %s2995_s15  ;;  %s30_s22 = sadd.s32 1, %s2999_s16 }
   0x8   : > { %p28_p0 = scmp.ge.s32.totalorder %s27_s21, 2  ;;  %s34_s23 = sadd.s32 1, %s3003_s17 }
   0x9   : > { %s85_s24 = smul.u32 %s2995_s15, %s2999_s16  ;;  %p102_p1 = scmp.ne.s32.totalorder %s2979_s11, %s2975_s10 }
   0xa   : > { %s3713_s21 = smov (%p28_p0, %s27_s21), 0  ;;  %s3715_s22 = smov (!%p28_p0, %s30_s22), %s2999_s16 }
   0xb   : > { %p103_p2 = scmp.eq.s32.totalorder %s1963_s19, 7  ;;  %p32_p3 = scmp.ge.s32.totalorder %s3715_s22, 2 }
   0xc   : > { %p108_p4 = scmp.ne.s32.totalorder %s2975_s10, %s2971_s9  ;;  %p109_p6 = scmp.eq.s32.totalorder %s1964_s20, 7 }
   0xd   : > { %p3101_p5 = por %p103_p2, %p102_p1  ;;  %s3717_s22 = smov (%p32_p3, %s3715_s22), 0 }
   0xe   : > { %s3719_s23 = smov (!%p32_p3, %s34_s23), %s3003_s17  ;;  %s86_s26 = smul.u32 %s3717_s22, %s3713_s21 }
   0xf   : > { %p3110_p7 = por %p109_p6, %p108_p4  ;;  %p36_p8 = scmp.ge.s32.totalorder %s3719_s23, 2 }
  0x10   : > { %p1967_p9 = scmp.ge.s32.totalorder %s3007_s18, 1  ;;  %s88_s28 = ssub.s32 %s85_s24, %s86_s26 }
  0x11   : > { %p138_p10 = scmp.lt.s32.totalorder %s3007_s18, 9  ;;  %s3721_s23 = smov (%p36_p8, %s3719_s23), 0 }
  0x12   : > { %s87_s29 = ssub.s32 %s3003_s17, %s3721_s23  ;;  %s92_s3 = sadd.s32 1, %s2979_s11 }
  0x13   : > { %p139_p11 = pnand %p1967_p9, %p138_p10  ;;  %s89_s30 = sor.u32 %s88_s28, %s87_s29 }
  0x14   : > { %p90_p12 = scmp.eq.s32.totalorder %s89_s30, 0  ;;  %s157_s5 = sand.u32 (!%p139_p11), 1, %s2975_s10   ;;  %v3129_v0 = vld [vmem:[%s3699_s1] sm:$0xff] (!%p139_p11)  ;;  %v3134_v1 = vld [vmem:[%s3699_s1 + $0x8] sm:$0xff] (!%p139_p11) }
  0x15   : > { %142 = sbr.rel (%p139_p11) target bundleno = 974 (0x3ce), region = 28  ;;  %p160_p13 = scmp.lt.s32.totalorder (!%p139_p11), %s2991_s14, 1 }
  0x16   : > { %s3122_s4 = scalar_select %p90_p12, %s2979_s11, %s92_s3  }
  0x17   : > { %s1968_s20 = sshll.u32 (!%p139_p11), %s157_s5, 3  ;;  %p168_p0 = scmp.eq.s32.totalorder (!%p139_p11), %s2987_s13, 0 }
  0x18   : > { %p169_p1 = scmp.eq.s32.totalorder (!%p139_p11), %s2983_s12, 0  ;;  %s3146_s3 = scalar_lea.vmem (!%p139_p11), [#allocation4], %s1968_s20 }
  0x1a   : > { %p170_p2 = pnand (!%p139_p11), %p169_p1, %p168_p0 }
  0x1c   : > { %s161_s24 = scalar_select %p160_p13, %s2991_s14, 1 }
  0x1d   : > { %173 = sbr.rel (%p170_p2) target bundleno = 36 (0x24), region = 32  ;;  %vm174_vm0 = vcmask (!%p170_p2), 130048   ;;  %v3009_v2 = vmov (!%p170_p2), 0.0  }
  0x1e   : > { %s2795_s26 = smul.u32 528, %s161_s24  ;;  %175 = vst.msk [vmem:[#allocation2] sm:$0xff] (!%p170_p2), %vm174_vm0, %v3009_v2  ;;  %176 = vst.msk [vmem:[#allocation3] sm:$0xff] (!%p170_p2), %vm174_vm0, %v3009_v2 }
  0x20   : > { %s3144_s30 = scalar_lea.vmem %s3698_s0, %s2795_s26 }
  0x24 PF: > { %p1970_p3 = scmp.ne.s32.totalorder %s2987_s13, 0 }
  0x25   : > { %s182_s6 = smul.u32 (!%p1970_p3), 192, %s2983_s12  ;;  %vm205_vm1 = vcmask (!%p1970_p3), 326656   ;;  %v3010_v3 = vmov (!%p1970_p3), 0.0|0.0   ;;  %v3011_v47 = vmov (!%p1970_p3), 0.0   ;;  %vm962_vm2 = vcmask (!%p1970_p3), 130048  }
  0x26   : > { %179 = sbr.rel (%p1970_p3) target bundleno = 432 (0x1b0), region = 36  ;;  %2315 = vmatprep.subr.bf16.mxu0 (!%p1970_p3), %v3010_v3  ;;  %2345 = vmatprep.subr.bf16.mxu1 (!%p1970_p3), %v3010_v3 }
  0x27   : > { %s3153_s7 = scalar_lea.vmem (!%p1970_p3), %s3144_s30, %s182_s6  ;;  %1971 = vmatprep.mubr.msk.f32.mxu0 (!%p1970_p3), %vm205_vm1, %v3134_v1  ;;  %1995 = vmatprep.mubr.msk.f32.mxu1 (!%p1970_p3), %vm205_vm1, %v3134_v1 }
  0x28   : > { %v184_v4 = vld [vmem:[%s3153_s7] sm:$0xff] (!%p1970_p3)  ;;  %v185_v5 = vld [vmem:[%s3153_s7 + $0x8] sm:$0xff] (!%p1970_p3)  ;;  %v1974_v6 = vld [vmem:[%s3153_s7 + $0x18] sm:$0xff] (!%p1970_p3) }
  0x29   : > { %v2316_v7 = vpack.c.bf16 (!%p1970_p3), %v185_v5, %v184_v4  ;;  %v1975_v8 = vld [vmem:[%s3153_s7 + $0x20] sm:$0xff] (!%p1970_p3)  ;;  %v186_v9 = vld [vmem:[%s3153_s7 + $0x10] sm:$0xff] (!%p1970_p3)  ;;  %v1976_v10 = vld [vmem:[%s3153_s7 + $0x28] sm:$0xff] (!%p1970_p3) }
  0x2a   : > { %v2346_v11 = vpack.c.bf16 (!%p1970_p3), %v1975_v8, %v1974_v6  ;;  %v1977_v12 = vld [vmem:[%s3153_s7 + $0x30] sm:$0xff] (!%p1970_p3)  ;;  %v2319_v13 = vpack.c.bf16 (!%p1970_p3), %v1974_v6, %v186_v9  ;;  %v1978_v15 = vld [vmem:[%s3153_s7 + $0x38] sm:$0xff] (!%p1970_p3)  ;;  %v1979_v16 = vld [vmem:[%s3153_s7 + $0x40] sm:$0xff] (!%p1970_p3)  ;;  %v2322_v17 = vpack.c.bf16 (!%p1970_p3), %v1976_v10, %v1975_v8 }
  0x2b   : > { %2317 = vmatpush1.bf16.msra.mxu0 (!%p1970_p3), %v2316_v7  ;;  %v2349_v14 = vpack.c.bf16 (!%p1970_p3), %v1977_v12, %v1976_v10  ;;  %v2352_v18 = vpack.c.bf16 (!%p1970_p3), %v1979_v16, %v1978_v15  ;;  %v1980_v19 = vld [vmem:[%s3153_s7 + $0x48] sm:$0xff] (!%p1970_p3)  ;;  %v1981_v20 = vld [vmem:[%s3153_s7 + $0x50] sm:$0xff] (!%p1970_p3)  ;;  %v3174_v21 = vpack.c.bf16 (!%p1970_p3), %v1978_v15, %v1977_v12  ;;  %v1982_v23 = vld [vmem:[%s3153_s7 + $0x58] sm:$0xff] (!%p1970_p3) }
  0x2c   : > { %2347 = vmatpush1.bf16.msra.mxu1 (!%p1970_p3), %v2346_v11  ;;  %2318 = vmatprep.subr.bf16.mxu0 (!%p1970_p3), %v3010_v3  ;;  %v2355_v22 = vpack.c.bf16 (!%p1970_p3), %v1981_v20, %v1980_v19  ;;  %v1983_v24 = vld [vmem:[%s3153_s7 + $0x60] sm:$0xff] (!%p1970_p3)  ;;  %v3181_v25 = vpack.c.bf16 (!%p1970_p3), %v1980_v19, %v1979_v16  ;;  %v1984_v27 = vld [vmem:[%s3153_s7 + $0x68] sm:$0xff] (!%p1970_p3)  ;;  %v1985_v28 = vld [vmem:[%s3153_s7 + $0x70] sm:$0xff] (!%p1970_p3)  ;;  %v2331_v29 = vpack.c.bf16 (!%p1970_p3), %v1982_v23, %v1981_v20 }
  0x2d   : > { %2348 = vmatprep.subr.bf16.mxu1 %v3010_v3  ;;  %v2358_v26 = vpack.c.bf16 %v1983_v24, %v1982_v23  ;;  %v2361_v30 = vpack.c.bf16 %v1985_v28, %v1984_v27  ;;  %v1986_v31 = vld [vmem:[%s3153_s7 + $0x78] sm:$0xff]  ;;  %v1987_v32 = vld [vmem:[%s3153_s7 + $0x80] sm:$0xff]  ;;  %v3192_v33 = vpack.c.bf16 %v1984_v27, %v1983_v24  ;;  %v1988_v35 = vld [vmem:[%s3153_s7 + $0x88] sm:$0xff] }
  0x2e   : > { %v3195_v34 = vpack.c.bf16 %v1987_v32, %v1986_v31  ;;  %v1989_v36 = vld [vmem:[%s3153_s7 + $0x90] sm:$0xff]  ;;  %v3201_v37 = vpack.c.bf16 %v1986_v31, %v1985_v28  ;;  %v1990_v39 = vld [vmem:[%s3153_s7 + $0x98] sm:$0xff]  ;;  %v1991_v40 = vld [vmem:[%s3153_s7 + $0xa0] sm:$0xff]  ;;  %v3211_v41 = vpack.c.bf16 %v1988_v35, %v1987_v32 }
  0x2f   : > { %2320 = vmatpush1.bf16.msra.mxu0 %v2319_v13  ;;  %v3205_v38 = vpack.c.bf16 %v1989_v36, %v1988_v35  ;;  %v3215_v42 = vpack.c.bf16 %v1991_v40, %v1990_v39  ;;  %v1992_v43 = vld [vmem:[%s3153_s7 + $0xa8] sm:$0xff]  ;;  %v1993_v44 = vld [vmem:[%s3153_s7 + $0xb0] sm:$0xff]  ;;  %v3221_v45 = vpack.c.bf16 %v1990_v39, %v1989_v36  ;;  %v1994_v48 = vld [vmem:[%s3153_s7 + $0xb8] sm:$0xff] }
  0x30   : > { %2350 = vmatpush1.bf16.msra.mxu1 %v2349_v14  ;;  %2321 = vmatprep.subr.bf16.mxu0 %v3010_v3  ;;  %v3225_v46 = vpack.c.bf16 %v1993_v44, %v1992_v43  ;;  %v2037_v49 = vld [vmem:[%s3153_s7 + $0xc0] sm:$0xff]  ;;  %v3263_v50 = vpack.c.bf16 %v1992_v43, %v1991_v40  ;;  %v2038_v52 = vld [vmem:[%s3153_s7 + $0xc8] sm:$0xff]  ;;  %v2039_v53 = vld [vmem:[%s3153_s7 + $0xd0] sm:$0xff]  ;;  %v3273_v54 = vpack.c.bf16 %v1994_v48, %v1993_v44 }
  0x31   : > { %2351 = vmatprep.subr.bf16.mxu1 %v3010_v3  ;;  %v3267_v51 = vpack.c.bf16 %v2037_v49, %v1994_v48  ;;  %v3277_v55 = vpack.c.bf16 %v2039_v53, %v2038_v52  ;;  %v2040_v56 = vld [vmem:[%s3153_s7 + $0xd8] sm:$0xff]  ;;  %v2041_v57 = vld [vmem:[%s3153_s7 + $0xe0] sm:$0xff]  ;;  %v3283_v58 = vpack.c.bf16 %v2038_v52, %v2037_v49  ;;  %v2042_v60 = vld [vmem:[%s3153_s7 + $0xe8] sm:$0xff] }
  0x32   : > { %v3287_v59 = vpack.c.bf16 %v2041_v57, %v2040_v56  ;;  %v2085_v61 = vld [vmem:[%s3153_s7 + $0xf0] sm:$0xff]  ;;  %v2457_v62 = vpack.c.bf16 %v2040_v56, %v2039_v53  ;;  %v2086_v2 = vld [vmem:[%s3153_s7 + $0xf8] sm:$0xff]  ;;  %v2087_v4 = vld [vmem:[%s3153_s7 + $0x100] sm:$0xff]  ;;  %v2460_v5 = vpack.c.bf16 %v2042_v60, %v2041_v57 }
  0x33   : > { %2323 = vmatpush1.bf16.msra.mxu0 %v2322_v17  ;;  %v2487_v63 = vpack.c.bf16 %v2085_v61, %v2042_v60  ;;  %v2490_v6 = vpack.c.bf16 %v2087_v4, %v2086_v2  ;;  %v2088_v7 = vld [vmem:[%s3153_s7 + $0x108] sm:$0xff]  ;;  %v2089_v8 = vld [vmem:[%s3153_s7 + $0x110] sm:$0xff]  ;;  %v2463_v9 = vpack.c.bf16 %v2086_v2, %v2085_v61  ;;  %v2090_v11 = vld [vmem:[%s3153_s7 + $0x118] sm:$0xff] }
  0x34   : > { %2353 = vmatpush1.bf16.msra.mxu1 %v2352_v18  ;;  %2324 = vmatprep.subr.bf16.mxu0 %v3010_v3  ;;  %v2493_v10 = vpack.c.bf16 %v2089_v8, %v2088_v7  ;;  %v2133_v12 = vld [vmem:[%s3153_s7 + $0x120] sm:$0xff]  ;;  %v2517_v13 = vpack.c.bf16 %v2088_v7, %v2087_v4  ;;  %v2134_v15 = vld [vmem:[%s3153_s7 + $0x128] sm:$0xff]  ;;  %v2135_v16 = vld [vmem:[%s3153_s7 + $0x130] sm:$0xff]  ;;  %v2520_v17 = vpack.c.bf16 %v2090_v11, %v2089_v8 }
  0x35   : > { %2354 = vmatprep.subr.bf16.mxu1 %v3010_v3  ;;  %v2547_v14 = vpack.c.bf16 %v2133_v12, %v2090_v11  ;;  %v2550_v18 = vpack.c.bf16 %v2135_v16, %v2134_v15  ;;  %v2136_v19 = vld [vmem:[%s3153_s7 + $0x138] sm:$0xff]  ;;  %v2137_v20 = vld [vmem:[%s3153_s7 + $0x140] sm:$0xff]  ;;  %v2138_v23 = vld [vmem:[%s3153_s7 + $0x148] sm:$0xff] }
  0x36   : > { %v180_v24 = vld [vmem:[#allocation2] sm:$0xff] }
  0x37   : > { %2326 = vmatpush1.bf16.msra.mxu0 %v3174_v21 }
  0x38   : > { %2356 = vmatpush1.bf16.msra.mxu1 %v2355_v22  ;;  %2327 = vmatprep.subr.bf16.mxu0 %v3010_v3 }
  0x39   : > { %2357 = vmatprep.subr.bf16.mxu1 %v3010_v3 }
  0x3b   : > { %2329 = vmatpush1.bf16.msra.mxu0 %v3181_v25 }
  0x3c   : > { %2359 = vmatpush1.bf16.msra.mxu1 %v2358_v26  ;;  %2330 = vmatprep.subr.bf16.mxu0 %v3010_v3 }
  0x3d   : > { %2360 = vmatprep.subr.bf16.mxu1 %v3010_v3 }
  0x3f   : > { %2332 = vmatpush1.bf16.msra.mxu0 %v2331_v29 }
  0x40   : > { %2362 = vmatpush1.bf16.msra.mxu1 %v2361_v30  ;;  %2333 = vmatprep.subr.bf16.mxu0 %v3010_v3 }
  0x41   : > { %2363 = vmatprep.subr.bf16.mxu1 %v3010_v3 }
  0x43   : > { %2335 = vmatpush1.bf16.msra.mxu0 %v3192_v33 }
  0x44   : > { %2365 = vmatpush1.bf16.msra.mxu1 %v3195_v34  ;;  %2336 = vmatprep.subr.bf16.mxu0 %v3010_v3 }
  0x45   : > { %2366 = vmatprep.subr.bf16.mxu1 %v3010_v3 }
  0x47   : > { %2338 = vmatpush1.bf16.msra.mxu0 %v3201_v37 }
  0x48   : > { %2368 = vmatpush1.bf16.msra.mxu1 %v3205_v38  ;;  %2339 = vmatprep.subr.bf16.mxu0 %v3010_v3 }
  0x49   : > { %2369 = vmatprep.subr.bf16.mxu1 %v3010_v3 }
  0x4b   : > { %2341 = vmatpush1.bf16.msra.mxu0 %v3211_v41 }
  0x4c   : > { %2371 = vmatpush1.bf16.msra.mxu1 %v3215_v42  ;;  %2342 = vmatprep.subr.bf16.mxu0 %v3010_v3 }
  0x4d   : > { %2372 = vmatprep.subr.bf16.mxu1 %v3010_v3 }
  0x4f   : > { %2344 = vmatpush1.bf16.msra.mxu0 %v3221_v45 }
  0x50   : > { %2374 = vmatpush1.bf16.msra.mxu1 %v3225_v46  ;;  %249 = vmatprep.subr.mxu0 %v3011_v47 }
  0x51   : > { %347 = vmatprep.subr.mxu1 %v3011_v47 }
  0x53   : > { %250 = vmatpush1.msra.mxu0 %v1991_v40 }
  0x54   : > { %274 = vmatmul.mubr.f32.vlgmr.msra.gmra.mrb[0].mxu0 %v3129_v0  ;;  %348 = vmatpush1.msra.mxu1 %v1994_v48 }
  0x55   : > { %2375 = vmatprep.subr.bf16.mxu0 %v3010_v3  ;;  %2405 = vmatprep.subr.bf16.mxu1 %v3010_v3 }
  0x56   : > { %2377 = vmatpush1.bf16.msra.mxu0 %v3174_v21  ;;  %372 = vmatmul.mubr.f32.vlgmr.msra.gmra.mrb[0].mxu1 %v3129_v0  ;;  %v2523_v21 = vpack.c.bf16 %v2134_v15, %v2133_v12 }
  0x57   : > { %2407 = vmatpush1.bf16.msra.mxu1 %v2355_v22  ;;  %2378 = vmatprep.subr.bf16.mxu0 %v3010_v3  ;;  %v2553_v22 = vpack.c.bf16 %v2137_v20, %v2136_v19 }
  0x58   : > { %2408 = vmatprep.subr.bf16.mxu1 %v3010_v3  ;;  %2019 = vmatprep.mubr.msk.f32.mxu0 %vm205_vm1, %v3134_v1 }
  0x59   : > { %2043 = vmatprep.mubr.msk.f32.mxu1 %vm205_vm1, %v3134_v1 }
  0x5a   : > { %2380 = vmatpush1.bf16.msra.mxu0 %v3181_v25  ;;  %v181_v25 = vld [vmem:[#allocation3] sm:$0xff] }
  0x5b   : > { %2410 = vmatpush1.bf16.msra.mxu1 %v2358_v26  ;;  %2381 = vmatprep.subr.bf16.mxu0 %v3010_v3 }
  0x5c   : > { %2411 = vmatprep.subr.bf16.mxu1 %v3010_v3 }
  0x5e   : > { %2383 = vmatpush1.bf16.msra.mxu0 %v2331_v29 }
  0x5f   : > { %2413 = vmatpush1.bf16.msra.mxu1 %v2361_v30  ;;  %2384 = vmatprep.subr.bf16.mxu0 %v3010_v3 }
  0x60   : > { %2414 = vmatprep.subr.bf16.mxu1 %v3010_v3 }
  0x62   : > { %2386 = vmatpush1.bf16.msra.mxu0 %v3192_v33 }
  0x63   : > { %2416 = vmatpush1.bf16.msra.mxu1 %v3195_v34  ;;  %2387 = vmatprep.subr.bf16.mxu0 %v3010_v3 }
  0x64   : > { %2417 = vmatprep.subr.bf16.mxu1 %v3010_v3 }
  0x66   : > { %2389 = vmatpush1.bf16.msra.mxu0 %v3201_v37 }
  0x67   : > { %2419 = vmatpush1.bf16.msra.mxu1 %v3205_v38  ;;  %2390 = vmatprep.subr.bf16.mxu0 %v3010_v3 }
  0x68   : > { %2420 = vmatprep.subr.bf16.mxu1 %v3010_v3 }
  0x6a   : > { %2392 = vmatpush1.bf16.msra.mxu0 %v3211_v41 }
  0x6b   : > { %2422 = vmatpush1.bf16.msra.mxu1 %v3215_v42  ;;  %2393 = vmatprep.subr.bf16.mxu0 %v3010_v3 }
  0x6c   : > { %2423 = vmatprep.subr.bf16.mxu1 %v3010_v3 }
  0x6e   : > { %2395 = vmatpush1.bf16.msra.mxu0 %v3221_v45 }
  0x6f   : > { %2425 = vmatpush1.bf16.msra.mxu1 %v3225_v46  ;;  %2396 = vmatprep.subr.bf16.mxu0 %v3010_v3 }
  0x70   : > { %2426 = vmatprep.subr.bf16.mxu1 %v3010_v3 }
  0x72   : > { %2398 = vmatpush1.bf16.msra.mxu0 %v3263_v50 }
  0x73   : > { %2428 = vmatpush1.bf16.msra.mxu1 %v3267_v51  ;;  %2399 = vmatprep.subr.bf16.mxu0 %v3010_v3 }
  0x74   : > { %2429 = vmatprep.subr.bf16.mxu1 %v3010_v3 }
  0x76   : > { %2401 = vmatpush1.bf16.msra.mxu0 %v3273_v54 }
  0x77   : > { %2431 = vmatpush1.bf16.msra.mxu1 %v3277_v55  ;;  %2402 = vmatprep.subr.bf16.mxu0 %v3010_v3 }
  0x78   : > { %2432 = vmatprep.subr.bf16.mxu1 %v3010_v3 }
  0x7a   : > { %2404 = vmatpush1.bf16.msra.mxu0 %v3283_v58 }
  0x7b   : > { %2434 = vmatpush1.bf16.msra.mxu1 %v3287_v59  ;;  %444 = vmatprep.subr.mxu0 %v3011_v47 }
  0x7c   : > { %541 = vmatprep.subr.mxu1 %v3011_v47 }
  0x7e   : > { %445 = vmatpush1.msra.mxu0 %v2039_v53 }
  0x7f   : > { %469 = vmatmul.mubr.f32.vlgmr.msra.gmra.mrb[2].mxu0 %v3129_v0  ;;  %542 = vmatpush1.msra.mxu1 %v2042_v60 }
  0x80   : > { %2435 = vmatprep.subr.bf16.mxu0 %v3010_v3  ;;  %2465 = vmatprep.subr.bf16.mxu1 %v3010_v3 }
  0x81   : > { %2437 = vmatpush1.bf16.msra.mxu0 %v3192_v33  ;;  %566 = vmatmul.mubr.f32.vlgmr.msra.gmra.mrb[2].mxu1 %v3129_v0 }
  0x82   : > { %2467 = vmatpush1.bf16.msra.mxu1 %v3195_v34  ;;  %2438 = vmatprep.subr.bf16.mxu0 %v3010_v3 }
  0x83   : > { %2468 = vmatprep.subr.bf16.mxu1 %v3010_v3  ;;  %2067 = vmatprep.mubr.msk.f32.mxu0 %vm205_vm1, %v3134_v1 }
  0x84   : > { %2091 = vmatprep.mubr.msk.f32.mxu1 %vm205_vm1, %v3134_v1 }
  0x85   : > { %2440 = vmatpush1.bf16.msra.mxu0 %v3201_v37 }
  0x86   : > { %2470 = vmatpush1.bf16.msra.mxu1 %v3205_v38  ;;  %2441 = vmatprep.subr.bf16.mxu0 %v3010_v3 }
  0x87   : > { %2471 = vmatprep.subr.bf16.mxu1 %v3010_v3 }
  0x89   : > { %2443 = vmatpush1.bf16.msra.mxu0 %v3211_v41 }
  0x8a   : > { %2473 = vmatpush1.bf16.msra.mxu1 %v3215_v42  ;;  %2444 = vmatprep.subr.bf16.mxu0 %v3010_v3 }
  0x8b   : > { %2474 = vmatprep.subr.bf16.mxu1 %v3010_v3 }
  0x8d   : > { %2446 = vmatpush1.bf16.msra.mxu0 %v3221_v45 }
  0x8e   : > { %2476 = vmatpush1.bf16.msra.mxu1 %v3225_v46  ;;  %2447 = vmatprep.subr.bf16.mxu0 %v3010_v3 }
  0x8f   : > { %2477 = vmatprep.subr.bf16.mxu1 %v3010_v3 }
  0x91   : > { %2449 = vmatpush1.bf16.msra.mxu0 %v3263_v50 }
  0x92   : > { %2479 = vmatpush1.bf16.msra.mxu1 %v3267_v51  ;;  %2450 = vmatprep.subr.bf16.mxu0 %v3010_v3 }
  0x93   : > { %2480 = vmatprep.subr.bf16.mxu1 %v3010_v3 }
  0x95   : > { %2452 = vmatpush1.bf16.msra.mxu0 %v3273_v54 }
  0x96   : > { %2482 = vmatpush1.bf16.msra.mxu1 %v3277_v55  ;;  %2453 = vmatprep.subr.bf16.mxu0 %v3010_v3 }
  0x97   : > { %2483 = vmatprep.subr.bf16.mxu1 %v3010_v3 }
  0x99   : > { %2455 = vmatpush1.bf16.msra.mxu0 %v3283_v58 }
  0x9a   : > { %2485 = vmatpush1.bf16.msra.mxu1 %v3287_v59  ;;  %2456 = vmatprep.subr.bf16.mxu0 %v3010_v3 }
  0x9b   : > { %2486 = vmatprep.subr.bf16.mxu1 %v3010_v3 }
  0x9d   : > { %2458 = vmatpush1.bf16.msra.mxu0 %v2457_v62 }
  0x9e   : > { %2488 = vmatpush1.bf16.msra.mxu1 %v2487_v63  ;;  %2459 = vmatprep.subr.bf16.mxu0 %v3010_v3 }
  0x9f   : > { %2489 = vmatprep.subr.bf16.mxu1 %v3010_v3 }
  0xa1   : > { %2461 = vmatpush1.bf16.msra.mxu0 %v2460_v5 }
  0xa2   : > { %2491 = vmatpush1.bf16.msra.mxu1 %v2490_v6  ;;  %2462 = vmatprep.subr.bf16.mxu0 %v3010_v3 }
  0xa3   : > { %2492 = vmatprep.subr.bf16.mxu1 %v3010_v3 }
  0xa5   : > { %2464 = vmatpush1.bf16.msra.mxu0 %v2463_v9 }
  0xa6   : > { %2494 = vmatpush1.bf16.msra.mxu1 %v2493_v10  ;;  %638 = vmatprep.subr.mxu0 %v3011_v47 }
  0xa7   : > { %735 = vmatprep.subr.mxu1 %v3011_v47 }
  0xa9   : > { %639 = vmatpush1.msra.mxu0 %v2087_v4 }
  0xaa   : > { %663 = vmatmul.mubr.f32.vlgmr.msra.gmra.mrb[4].mxu0 %v3129_v0  ;;  %736 = vmatpush1.msra.mxu1 %v2090_v11 }
  0xab   : > { %2495 = vmatprep.subr.bf16.mxu0 %v3010_v3  ;;  %2525 = vmatprep.subr.bf16.mxu1 %v3010_v3 }
  0xac   : > { %2497 = vmatpush1.bf16.msra.mxu0 %v3221_v45  ;;  %760 = vmatmul.mubr.f32.vlgmr.msra.gmra.mrb[4].mxu1 %v3129_v0 }
  0xad   : > { %2527 = vmatpush1.bf16.msra.mxu1 %v3225_v46  ;;  %2498 = vmatprep.subr.bf16.mxu0 %v3010_v3 }
  0xae   : > { %2528 = vmatprep.subr.bf16.mxu1 %v3010_v3  ;;  %2115 = vmatprep.mubr.msk.f32.mxu0 %vm205_vm1, %v3134_v1 }
  0xaf   : > { %2139 = vmatprep.mubr.msk.f32.mxu1 %vm205_vm1, %v3134_v1 }
  0xb0   : > { %2500 = vmatpush1.bf16.msra.mxu0 %v3263_v50 }
  0xb1   : > { %2530 = vmatpush1.bf16.msra.mxu1 %v3267_v51  ;;  %2501 = vmatprep.subr.bf16.mxu0 %v3010_v3 }
  0xb2   : > { %2531 = vmatprep.subr.bf16.mxu1 %v3010_v3 }
  0xb4   : > { %2503 = vmatpush1.bf16.msra.mxu0 %v3273_v54 }
  0xb5   : > { %2533 = vmatpush1.bf16.msra.mxu1 %v3277_v55  ;;  %2504 = vmatprep.subr.bf16.mxu0 %v3010_v3 }
  0xb6   : > { %2534 = vmatprep.subr.bf16.mxu1 %v3010_v3 }
  0xb8   : > { %2506 = vmatpush1.bf16.msra.mxu0 %v3283_v58 }
  0xb9   : > { %2536 = vmatpush1.bf16.msra.mxu1 %v3287_v59  ;;  %2507 = vmatprep.subr.bf16.mxu0 %v3010_v3 }
  0xba   : > { %2537 = vmatprep.subr.bf16.mxu1 %v3010_v3 }
  0xbc   : > { %2509 = vmatpush1.bf16.msra.mxu0 %v2457_v62 }
  0xbd   : > { %2539 = vmatpush1.bf16.msra.mxu1 %v2487_v63  ;;  %2510 = vmatprep.subr.bf16.mxu0 %v3010_v3 }
  0xbe   : > { %2540 = vmatprep.subr.bf16.mxu1 %v3010_v3 }
  0xc0   : > { %2512 = vmatpush1.bf16.msra.mxu0 %v2460_v5 }
  0xc1   : > { %2542 = vmatpush1.bf16.msra.mxu1 %v2490_v6  ;;  %2513 = vmatprep.subr.bf16.mxu0 %v3010_v3 }
  0xc2   : > { %2543 = vmatprep.subr.bf16.mxu1 %v3010_v3 }
  0xc4   : > { %2515 = vmatpush1.bf16.msra.mxu0 %v2463_v9 }
  0xc5   : > { %2545 = vmatpush1.bf16.msra.mxu1 %v2493_v10  ;;  %2516 = vmatprep.subr.bf16.mxu0 %v3010_v3 }
  0xc6   : > { %2546 = vmatprep.subr.bf16.mxu1 %v3010_v3 }
  0xc8   : > { %2518 = vmatpush1.bf16.msra.mxu0 %v2517_v13 }
  0xc9   : > { %2548 = vmatpush1.bf16.msra.mxu1 %v2547_v14  ;;  %2519 = vmatprep.subr.bf16.mxu0 %v3010_v3 }
  0xca   : > { %2549 = vmatprep.subr.bf16.mxu1 %v3010_v3 }
  0xcc   : > { %2521 = vmatpush1.bf16.msra.mxu0 %v2520_v17 }
  0xcd   : > { %2551 = vmatpush1.bf16.msra.mxu1 %v2550_v18  ;;  %2522 = vmatprep.subr.bf16.mxu0 %v3010_v3 }
  0xce   : > { %2552 = vmatprep.subr.bf16.mxu1 %v3010_v3 }
  0xd0   : > { %2524 = vmatpush1.bf16.msra.mxu0 %v2523_v21 }
  0xd1   : > { %2554 = vmatpush1.bf16.msra.mxu1 %v2553_v22  ;;  %832 = vmatprep.subr.mxu0 %v3011_v47 }
  0xd2   : > { %929 = vmatprep.subr.mxu1 %v3011_v47 }
  0xd4   : > { %833 = vmatpush1.msra.mxu0 %v2135_v16 }
  0xd5   : > { %857 = vmatmul.mubr.f32.vlgmr.msra.gmra.mrb[6].mxu0 %v3129_v0  ;;  %930 = vmatpush1.msra.mxu1 %v2138_v23 }
  0xd6   : > { %954 = vmatmul.mubr.f32.vlgmr.msra.gmra.mrb[6].mxu1 %v3129_v0 }
 0x127   : > { %v275_v26 = vpop.f32.mrb[0].mxu0 }
 0x128   : > { %v279_v27 = vadd.f32 %v275_v26, %v180_v24  ;;  %v280_v28 = vmul.f32 %v275_v26, %v275_v26  ;;  %v277_v29 = vpop.f32.mrb[1].mxu0 }
 0x129   : > { %v373_v3 = vpop.f32.mrb[0].mxu1 }
 0x12a   : > { %v281_v30 = vadd.f32 %v280_v28, %v181_v25  ;;  %v377_v31 = vadd.f32 %v373_v3, %v279_v27  ;;  %v378_v32 = vmul.f32 %v373_v3, %v373_v3  ;;  %v375_v33 = vpop.f32.mrb[1].mxu1 }
 0x12c   : > { %v379_v34 = vadd.f32 %v378_v32, %v281_v30 }
 0x152   : > { %v470_v35 = vpop.f32.mrb[2].mxu0 }
 0x153   : > { %v474_v36 = vadd.f32 %v470_v35, %v377_v31  ;;  %v475_v37 = vmul.f32 %v470_v35, %v470_v35  ;;  %v472_v38 = vpop.f32.mrb[3].mxu0 }
 0x154   : > { %v567_v39 = vpop.f32.mrb[2].mxu1 }
 0x155   : > { %v476_v40 = vadd.f32 %v475_v37, %v379_v34  ;;  %v571_v41 = vadd.f32 %v567_v39, %v474_v36  ;;  %v572_v42 = vmul.f32 %v567_v39, %v567_v39  ;;  %v569_v43 = vpop.f32.mrb[3].mxu1 }
 0x157   : > { %v573_v44 = vadd.f32 %v572_v42, %v476_v40 }
 0x17d   : > { %v664_v45 = vpop.f32.mrb[4].mxu0 }
 0x17e   : > { %v668_v46 = vadd.f32 %v664_v45, %v571_v41  ;;  %v669_v47 = vmul.f32 %v664_v45, %v664_v45  ;;  %v666_v48 = vpop.f32.mrb[5].mxu0 }
 0x17f   : > { %v761_v49 = vpop.f32.mrb[4].mxu1 }
 0x180   : > { %v670_v50 = vadd.f32 %v669_v47, %v573_v44  ;;  %v765_v51 = vadd.f32 %v761_v49, %v668_v46  ;;  %v766_v52 = vmul.f32 %v761_v49, %v761_v49  ;;  %v763_v53 = vpop.f32.mrb[5].mxu1 }
 0x182   : > { %v767_v54 = vadd.f32 %v766_v52, %v670_v50 }
 0x1a8   : > { %v858_v55 = vpop.f32.mrb[6].mxu0 }
 0x1a9   : > { %v862_v56 = vadd.f32 %v858_v55, %v765_v51  ;;  %v863_v57 = vmul.f32 %v858_v55, %v858_v55  ;;  %v860_v58 = vpop.f32.mrb[7].mxu0  ;;  %v955_v59 = vpop.f32.mrb[6].mxu1 }
 0x1aa   : > { %v960_v60 = vmul.f32 %v955_v59, %v955_v59  ;;  %v957_v61 = vpop.f32.mrb[7].mxu1 }
 0x1ab   : > { %v864_v62 = vadd.f32 %v863_v57, %v767_v54  ;;  %v959_v63 = vadd.f32 %v955_v59, %v862_v56 }
 0x1ad   : > { %v961_v2 = vadd.f32 %v960_v60, %v864_v62  ;;  %963 = vst.msk [vmem:[#allocation2] sm:$0xff] %vm962_vm2, %v959_v63 }
 0x1af   : > { %964 = vst.msk [vmem:[#allocation3] sm:$0xff] %vm962_vm2, %v961_v2 }
 0x1b0 PF: > { %p2140_p4 = scmp.ne.s32.totalorder %s2987_s13, 1 }
 0x1b1   : > { %s985_s8 = smul.u32 (!%p2140_p4), 192, %s2983_s12  ;;  %vm1008_vm3 = vcmask (!%p2140_p4), 326656   ;;  %vm970_vm4 = vcmask (!%p2140_p4), 130048   ;;  %v3012_v5 = vmov (!%p2140_p4), 0.0|0.0   ;;  %v3013_v51 = vmov (!%p2140_p4), 0.0   ;;  %s3014_s20 = smov (!%p2140_p4), 16  }
 0x1b2   : > { %968 = sbr.rel (%p2140_p4) target bundleno = 948 (0x3b4), region = 40  ;;  %2555 = vmatprep.subr.bf16.mxu0 (!%p2140_p4), %v3012_v5  ;;  %2585 = vmatprep.subr.bf16.mxu1 (!%p2140_p4), %v3012_v5  ;;  %s3015_s24 = smov (!%p2140_p4), 32   ;;  %vm1188_vm5 = vcmask (!%p2140_p4), 261248   ;;  %vm1291_vm6 = vcmask (!%p2140_p4), 392448   ;;  %vm1394_vm7 = vcmask (!%p2140_p4), 523648   ;;  %vm1497_vm8 = vcmask (!%p2140_p4), 654848  }
 0x1b3   : > { %s3393_s19 = scalar_lea.vmem (!%p2140_p4), %s3144_s30, %s985_s8  ;;  %2141 = vmatprep.mubr.msk.f32.mxu0 (!%p2140_p4), %vm1008_vm3, %v3134_v1  ;;  %2165 = vmatprep.mubr.msk.f32.mxu1 (!%p2140_p4), %vm1008_vm3, %v3134_v1  ;;  %s3016_s26 = smov (!%p2140_p4), 48   ;;  %vm1600_vm9 = vcmask (!%p2140_p4), 786048   ;;  %vm1703_vm10 = vcmask (!%p2140_p4), 917248   ;;  %vm1806_vm11 = vcmask (!%p2140_p4), 1048448  }
 0x1b4   : > { %v969_v4 = vld [vmem:[#allocation2] sm:$0xff] (!%p2140_p4)  ;;  %v988_v9 = vld [vmem:[%s3393_s19 + $0x8] sm:$0xff] (!%p2140_p4)  ;;  %v2144_v10 = vld [vmem:[%s3393_s19 + $0x18] sm:$0xff] (!%p2140_p4)  ;;  %s3017_s28 = smov (!%p2140_p4), 64   ;;  %s3018_s29 = smov (!%p2140_p4), 80  }
 0x1b5   : > { %v971_v6 = vsel (!%p2140_p4), %vm970_vm4, %v969_v4, 0.0  ;;  %v987_v8 = vld [vmem:[%s3393_s19] sm:$0xff] (!%p2140_p4)  ;;  %v989_v13 = vld [vmem:[%s3393_s19 + $0x10] sm:$0xff] (!%p2140_p4)  ;;  %v2146_v14 = vld [vmem:[%s3393_s19 + $0x28] sm:$0xff] (!%p2140_p4)  ;;  %s3019_s30 = smov (!%p2140_p4), 96   ;;  %s3020_s6 = smov (!%p2140_p4), 112  }
 0x1b6   : > { %v975_v7 = vld [vmem:[#allocation3] sm:$0xff] (!%p2140_p4)  ;;  %972 = vadd.xlane.f32.xlu0 (!%p2140_p4), %v971_v6  ;;  %v2556_v11 = vpack.c.bf16 (!%p2140_p4), %v988_v9, %v987_v8  ;;  %v2145_v12 = vld [vmem:[%s3393_s19 + $0x20] sm:$0xff] (!%p2140_p4)  ;;  %v2147_v16 = vld [vmem:[%s3393_s19 + $0x30] sm:$0xff] (!%p2140_p4)  ;;  %v2559_v18 = vpack.c.bf16 (!%p2140_p4), %v2144_v10, %v989_v13 }
 0x1b7   : > { %v2586_v15 = vpack.c.bf16 (!%p2140_p4), %v2145_v12, %v2144_v10  ;;  %v976_v17 = vsel (!%p2140_p4), %vm970_vm4, %v975_v7, 0.0  ;;  %v2589_v19 = vpack.c.bf16 (!%p2140_p4), %v2147_v16, %v2146_v14  ;;  %v2148_v20 = vld [vmem:[%s3393_s19 + $0x38] sm:$0xff] (!%p2140_p4)  ;;  %v2149_v21 = vld [vmem:[%s3393_s19 + $0x40] sm:$0xff] (!%p2140_p4)  ;;  %v2562_v22 = vpack.c.bf16 (!%p2140_p4), %v2146_v14, %v2145_v12  ;;  %v2150_v24 = vld [vmem:[%s3393_s19 + $0x48] sm:$0xff] (!%p2140_p4) }
 0x1b8   : > { %2557 = vmatpush1.bf16.msra.mxu0 (!%p2140_p4), %v2556_v11  ;;  %v2592_v23 = vpack.c.bf16 (!%p2140_p4), %v2149_v21, %v2148_v20  ;;  %v2151_v25 = vld [vmem:[%s3393_s19 + $0x50] sm:$0xff] (!%p2140_p4)  ;;  %v3415_v26 = vpack.c.bf16 (!%p2140_p4), %v2148_v20, %v2147_v16  ;;  %v2152_v28 = vld [vmem:[%s3393_s19 + $0x58] sm:$0xff] (!%p2140_p4)  ;;  %v2153_v29 = vld [vmem:[%s3393_s19 + $0x60] sm:$0xff] (!%p2140_p4)  ;;  %v3422_v3 = vpack.c.bf16 (!%p2140_p4), %v2150_v24, %v2149_v21 }
 0x1b9   : > { %2587 = vmatpush1.bf16.msra.mxu1 %v2586_v15  ;;  %2558 = vmatprep.subr.bf16.mxu0 %v3012_v5  ;;  %v2595_v27 = vpack.c.bf16 %v2151_v25, %v2150_v24  ;;  %v2598_v30 = vpack.c.bf16 %v2153_v29, %v2152_v28  ;;  %v2154_v31 = vld [vmem:[%s3393_s19 + $0x68] sm:$0xff]  ;;  %v2155_v32 = vld [vmem:[%s3393_s19 + $0x70] sm:$0xff]  ;;  %v2571_v33 = vpack.c.bf16 %v2152_v28, %v2151_v25  ;;  %v2156_v35 = vld [vmem:[%s3393_s19 + $0x78] sm:$0xff] }
 0x1ba   : > { %2588 = vmatprep.subr.bf16.mxu1 %v3012_v5  ;;  %977 = vadd.xlane.f32.xlu0 %v976_v17  ;;  %v2601_v34 = vpack.c.bf16 %v2155_v32, %v2154_v31  ;;  %v2157_v36 = vld [vmem:[%s3393_s19 + $0x80] sm:$0xff]  ;;  %v3433_v37 = vpack.c.bf16 %v2154_v31, %v2153_v29  ;;  %v2158_v39 = vld [vmem:[%s3393_s19 + $0x88] sm:$0xff]  ;;  %v2159_v40 = vld [vmem:[%s3393_s19 + $0x90] sm:$0xff]  ;;  %v3442_v41 = vpack.c.bf16 %v2156_v35, %v2155_v32 }
 0x1bb   : > { %v3436_v38 = vpack.c.bf16 %v2157_v36, %v2156_v35  ;;  %v3446_v42 = vpack.c.bf16 %v2159_v40, %v2158_v39  ;;  %v2160_v43 = vld [vmem:[%s3393_s19 + $0x98] sm:$0xff]  ;;  %v2161_v44 = vld [vmem:[%s3393_s19 + $0xa0] sm:$0xff]  ;;  %v3452_v45 = vpack.c.bf16 %v2158_v39, %v2157_v36  ;;  %v2162_v47 = vld [vmem:[%s3393_s19 + $0xa8] sm:$0xff] }
 0x1bc   : > { %2560 = vmatpush1.bf16.msra.mxu0 %v2559_v18  ;;  %v3456_v46 = vpack.c.bf16 %v2161_v44, %v2160_v43  ;;  %v2163_v48 = vld [vmem:[%s3393_s19 + $0xb0] sm:$0xff]  ;;  %v3462_v49 = vpack.c.bf16 %v2160_v43, %v2159_v40  ;;  %v2164_v52 = vld [vmem:[%s3393_s19 + $0xb8] sm:$0xff]  ;;  %v2207_v53 = vld [vmem:[%s3393_s19 + $0xc0] sm:$0xff]  ;;  %v3504_v54 = vpack.c.bf16 %v2162_v47, %v2161_v44 }
 0x1bd   : > { %2590 = vmatpush1.bf16.msra.mxu1 %v2589_v19  ;;  %2561 = vmatprep.subr.bf16.mxu0 %v3012_v5  ;;  %v3466_v50 = vpack.c.bf16 %v2163_v48, %v2162_v47  ;;  %v3508_v55 = vpack.c.bf16 %v2207_v53, %v2164_v52  ;;  %v2208_v56 = vld [vmem:[%s3393_s19 + $0xc8] sm:$0xff]  ;;  %v2209_v57 = vld [vmem:[%s3393_s19 + $0xd0] sm:$0xff]  ;;  %v3514_v58 = vpack.c.bf16 %v2164_v52, %v2163_v48  ;;  %v2210_v60 = vld [vmem:[%s3393_s19 + $0xd8] sm:$0xff] }
 0x1be   : > { %2591 = vmatprep.subr.bf16.mxu1 %v3012_v5  ;;  %v3518_v59 = vpack.c.bf16 %v2209_v57, %v2208_v56  ;;  %v2211_v61 = vld [vmem:[%s3393_s19 + $0xe0] sm:$0xff]  ;;  %v3524_v62 = vpack.c.bf16 %v2208_v56, %v2207_v53  ;;  %v2212_v2 = vld [vmem:[%s3393_s19 + $0xe8] sm:$0xff]  ;;  %v2255_v4 = vld [vmem:[%s3393_s19 + $0xf0] sm:$0xff]  ;;  %v2697_v6 = vpack.c.bf16 %v2210_v60, %v2209_v57 }
 0x1bf   : > { %v3528_v63 = vpack.c.bf16 %v2211_v61, %v2210_v60  ;;  %v2727_v7 = vpack.c.bf16 %v2255_v4, %v2212_v2  ;;  %v2256_v8 = vld [vmem:[%s3393_s19 + $0xf8] sm:$0xff]  ;;  %v2257_v9 = vld [vmem:[%s3393_s19 + $0x100] sm:$0xff]  ;;  %v2700_v10 = vpack.c.bf16 %v2212_v2, %v2211_v61  ;;  %v2258_v12 = vld [vmem:[%s3393_s19 + $0x108] sm:$0xff] }
 0x1c0   : > { %2563 = vmatpush1.bf16.msra.mxu0 %v2562_v22  ;;  %v2730_v11 = vpack.c.bf16 %v2257_v9, %v2256_v8  ;;  %v2259_v13 = vld [vmem:[%s3393_s19 + $0x110] sm:$0xff]  ;;  %v2703_v14 = vpack.c.bf16 %v2256_v8, %v2255_v4  ;;  %v2260_v16 = vld [vmem:[%s3393_s19 + $0x118] sm:$0xff]  ;;  %v2757_v17 = vpack.c.bf16 %v2258_v12, %v2257_v9  ;;  %v2304_v19 = vld [vmem:[%s3393_s19 + $0x128] sm:$0xff] }
 0x1c1   : > { %2593 = vmatpush1.bf16.msra.mxu1 %v2592_v23  ;;  %2564 = vmatprep.subr.bf16.mxu0 %v3012_v5  ;;  %v2733_v15 = vpack.c.bf16 %v2259_v13, %v2258_v12  ;;  %v2305_v20 = vld [vmem:[%s3393_s19 + $0x130] sm:$0xff]  ;;  %v2760_v21 = vpack.c.bf16 %v2260_v16, %v2259_v13  ;;  %v2306_v23 = vld [vmem:[%s3393_s19 + $0x138] sm:$0xff]  ;;  %v2307_v24 = vld [vmem:[%s3393_s19 + $0x140] sm:$0xff] }
 0x1c2   : > { %2594 = vmatprep.subr.bf16.mxu1 %v3012_v5  ;;  %v2790_v22 = vpack.c.bf16 %v2305_v20, %v2304_v19 }
 0x1c4   : > { %2566 = vmatpush1.bf16.msra.mxu0 %v3415_v26 }
 0x1c5   : > { %2596 = vmatpush1.bf16.msra.mxu1 %v2595_v27  ;;  %2567 = vmatprep.subr.bf16.mxu0 %v3012_v5 }
 0x1c6   : > { %2597 = vmatprep.subr.bf16.mxu1 %v3012_v5 }
 0x1c8   : > { %2569 = vmatpush1.bf16.msra.mxu0 %v3422_v3 }
 0x1c9   : > { %2599 = vmatpush1.bf16.msra.mxu1 %v2598_v30  ;;  %2570 = vmatprep.subr.bf16.mxu0 %v3012_v5 }
 0x1ca   : > { %2600 = vmatprep.subr.bf16.mxu1 %v3012_v5 }
 0x1cc   : > { %2572 = vmatpush1.bf16.msra.mxu0 %v2571_v33 }
 0x1cd   : > { %2602 = vmatpush1.bf16.msra.mxu1 %v2601_v34  ;;  %2573 = vmatprep.subr.bf16.mxu0 %v3012_v5 }
 0x1ce   : > { %2603 = vmatprep.subr.bf16.mxu1 %v3012_v5 }
 0x1d0   : > { %2575 = vmatpush1.bf16.msra.mxu0 %v3433_v37 }
 0x1d1   : > { %2605 = vmatpush1.bf16.msra.mxu1 %v3436_v38  ;;  %2576 = vmatprep.subr.bf16.mxu0 %v3012_v5 }
 0x1d2   : > { %2606 = vmatprep.subr.bf16.mxu1 %v3012_v5 }
 0x1d4   : > { %2578 = vmatpush1.bf16.msra.mxu0 %v3442_v41 }
 0x1d5   : > { %2608 = vmatpush1.bf16.msra.mxu1 %v3446_v42  ;;  %2579 = vmatprep.subr.bf16.mxu0 %v3012_v5 }
 0x1d6   : > { %2609 = vmatprep.subr.bf16.mxu1 %v3012_v5 }
 0x1d8   : > { %2581 = vmatpush1.bf16.msra.mxu0 %v3452_v45 }
 0x1d9   : > { %2611 = vmatpush1.bf16.msra.mxu1 %v3456_v46  ;;  %2582 = vmatprep.subr.bf16.mxu0 %v3012_v5 }
 0x1da   : > { %2612 = vmatprep.subr.bf16.mxu1 %v3012_v5 }
 0x1dc   : > { %2584 = vmatpush1.bf16.msra.mxu0 %v3462_v49 }
 0x1dd   : > { %2614 = vmatpush1.bf16.msra.mxu1 %v3466_v50  ;;  %1052 = vmatprep.subr.mxu0 %v3013_v51 }
 0x1de   : > { %1151 = vmatprep.subr.mxu1 %v3013_v51 }
 0x1e0   : > { %1053 = vmatpush1.msra.mxu0 %v2161_v44 }
 0x1e1   : > { %1152 = vmatpush1.msra.mxu1 %v2164_v52  ;;  %1077 = vmatmul.mubr.f32.vlgmr.msra.gmra.mrb[0].mxu0 %v3129_v0 }
 0x1e2   : > { %2615 = vmatprep.subr.bf16.mxu0 %v3012_v5  ;;  %2645 = vmatprep.subr.bf16.mxu1 %v3012_v5 }
 0x1e3   : > { %1176 = vmatmul.mubr.f32.vlgmr.msra.gmra.mrb[0].mxu1 %v3129_v0  ;;  %2617 = vmatpush1.bf16.msra.mxu0 %v3415_v26  ;;  %v2793_v26 = vpack.c.bf16 %v2307_v24, %v2306_v23 }
 0x1e4   : > { %2647 = vmatpush1.bf16.msra.mxu1 %v2595_v27  ;;  %2618 = vmatprep.subr.bf16.mxu0 %v3012_v5  ;;  %v2308_v27 = vld [vmem:[%s3393_s19 + $0x148] sm:$0xff] }
 0x1e5   : > { %2648 = vmatprep.subr.bf16.mxu1 %v3012_v5  ;;  %2189 = vmatprep.mubr.msk.f32.mxu0 %vm1008_vm3, %v3134_v1 }
 0x1e6   : > { %2213 = vmatprep.mubr.msk.f32.mxu1 %vm1008_vm3, %v3134_v1 }
 0x1e7   : > { %2620 = vmatpush1.bf16.msra.mxu0 %v3422_v3 }
 0x1e8   : > { %2650 = vmatpush1.bf16.msra.mxu1 %v2598_v30  ;;  %2621 = vmatprep.subr.bf16.mxu0 %v3012_v5 }
 0x1e9   : > { %2651 = vmatprep.subr.bf16.mxu1 %v3012_v5 }
 0x1eb   : > { %2623 = vmatpush1.bf16.msra.mxu0 %v2571_v33 }
 0x1ec   : > { %2653 = vmatpush1.bf16.msra.mxu1 %v2601_v34  ;;  %2624 = vmatprep.subr.bf16.mxu0 %v3012_v5 }
 0x1ed   : > { %2654 = vmatprep.subr.bf16.mxu1 %v3012_v5 }
 0x1ef   : > { %2626 = vmatpush1.bf16.msra.mxu0 %v3433_v37 }
 0x1f0   : > { %2656 = vmatpush1.bf16.msra.mxu1 %v3436_v38  ;;  %2627 = vmatprep.subr.bf16.mxu0 %v3012_v5 }
 0x1f1   : > { %2657 = vmatprep.subr.bf16.mxu1 %v3012_v5 }
 0x1f3   : > { %2629 = vmatpush1.bf16.msra.mxu0 %v3442_v41 }
 0x1f4   : > { %2659 = vmatpush1.bf16.msra.mxu1 %v3446_v42  ;;  %2630 = vmatprep.subr.bf16.mxu0 %v3012_v5 }
 0x1f5   : > { %2660 = vmatprep.subr.bf16.mxu1 %v3012_v5 }
 0x1f7   : > { %2632 = vmatpush1.bf16.msra.mxu0 %v3452_v45 }
 0x1f8   : > { %2662 = vmatpush1.bf16.msra.mxu1 %v3456_v46  ;;  %2633 = vmatprep.subr.bf16.mxu0 %v3012_v5 }
 0x1f9   : > { %2663 = vmatprep.subr.bf16.mxu1 %v3012_v5 }
 0x1fb   : > { %2635 = vmatpush1.bf16.msra.mxu0 %v3462_v49 }
 0x1fc   : > { %2665 = vmatpush1.bf16.msra.mxu1 %v3466_v50  ;;  %2636 = vmatprep.subr.bf16.mxu0 %v3012_v5 }
 0x1fd   : > { %2666 = vmatprep.subr.bf16.mxu1 %v3012_v5 }
 0x1ff   : > { %2638 = vmatpush1.bf16.msra.mxu0 %v3504_v54 }
 0x200   : > { %2668 = vmatpush1.bf16.msra.mxu1 %v3508_v55  ;;  %2639 = vmatprep.subr.bf16.mxu0 %v3012_v5 }
 0x201   : > { %2669 = vmatprep.subr.bf16.mxu1 %v3012_v5 }
 0x203   : > { %2641 = vmatpush1.bf16.msra.mxu0 %v3514_v58 }
 0x204   : > { %2671 = vmatpush1.bf16.msra.mxu1 %v3518_v59  ;;  %2642 = vmatprep.subr.bf16.mxu0 %v3012_v5 }
 0x205   : > { %2672 = vmatprep.subr.bf16.mxu1 %v3012_v5 }
 0x207   : > { %2644 = vmatpush1.bf16.msra.mxu0 %v3524_v62 }
 0x208   : > { %2674 = vmatpush1.bf16.msra.mxu1 %v3528_v63  ;;  %1254 = vmatprep.subr.mxu0 %v3013_v51 }
 0x209   : > { %1357 = vmatprep.subr.mxu1 %v3013_v51 }
 0x20b   : > { %1255 = vmatpush1.msra.mxu0 %v2209_v57 }
 0x20c   : > { %1358 = vmatpush1.msra.mxu1 %v2212_v2  ;;  %1279 = vmatmul.mubr.f32.vlgmr.msra.gmra.mrb[2].mxu0 %v3129_v0 }
 0x20d   : > { %2675 = vmatprep.subr.bf16.mxu0 %v3012_v5  ;;  %2705 = vmatprep.subr.bf16.mxu1 %v3012_v5 }
 0x20e   : > { %1382 = vmatmul.mubr.f32.vlgmr.msra.gmra.mrb[2].mxu1 %v3129_v0  ;;  %2677 = vmatpush1.bf16.msra.mxu0 %v3433_v37 }
 0x20f   : > { %2707 = vmatpush1.bf16.msra.mxu1 %v3436_v38  ;;  %2678 = vmatprep.subr.bf16.mxu0 %v3012_v5 }
 0x210   : > { %2708 = vmatprep.subr.bf16.mxu1 %v3012_v5  ;;  %2237 = vmatprep.mubr.msk.f32.mxu0 %vm1008_vm3, %v3134_v1 }
 0x211   : > { %2261 = vmatprep.mubr.msk.f32.mxu1 %vm1008_vm3, %v3134_v1 }
 0x212   : > { %2680 = vmatpush1.bf16.msra.mxu0 %v3442_v41 }
 0x213   : > { %2710 = vmatpush1.bf16.msra.mxu1 %v3446_v42  ;;  %2681 = vmatprep.subr.bf16.mxu0 %v3012_v5 }
 0x214   : > { %2711 = vmatprep.subr.bf16.mxu1 %v3012_v5 }
 0x216   : > { %2683 = vmatpush1.bf16.msra.mxu0 %v3452_v45 }
 0x217   : > { %2713 = vmatpush1.bf16.msra.mxu1 %v3456_v46  ;;  %2684 = vmatprep.subr.bf16.mxu0 %v3012_v5 }
 0x218   : > { %2714 = vmatprep.subr.bf16.mxu1 %v3012_v5 }
 0x21a   : > { %2686 = vmatpush1.bf16.msra.mxu0 %v3462_v49 }
 0x21b   : > { %2716 = vmatpush1.bf16.msra.mxu1 %v3466_v50  ;;  %2687 = vmatprep.subr.bf16.mxu0 %v3012_v5 }
 0x21c   : > { %2717 = vmatprep.subr.bf16.mxu1 %v3012_v5 }
 0x21e   : > { %2689 = vmatpush1.bf16.msra.mxu0 %v3504_v54 }
 0x21f   : > { %2719 = vmatpush1.bf16.msra.mxu1 %v3508_v55  ;;  %2690 = vmatprep.subr.bf16.mxu0 %v3012_v5 }
 0x220   : > { %2720 = vmatprep.subr.bf16.mxu1 %v3012_v5 }
 0x222   : > { %2692 = vmatpush1.bf16.msra.mxu0 %v3514_v58 }
 0x223   : > { %2722 = vmatpush1.bf16.msra.mxu1 %v3518_v59  ;;  %2693 = vmatprep.subr.bf16.mxu0 %v3012_v5 }
 0x224   : > { %2723 = vmatprep.subr.bf16.mxu1 %v3012_v5 }
 0x226   : > { %2695 = vmatpush1.bf16.msra.mxu0 %v3524_v62 }
 0x227   : > { %2725 = vmatpush1.bf16.msra.mxu1 %v3528_v63  ;;  %2696 = vmatprep.subr.bf16.mxu0 %v3012_v5 }
 0x228   : > { %2726 = vmatprep.subr.bf16.mxu1 %v3012_v5 }
 0x22a   : > { %2698 = vmatpush1.bf16.msra.mxu0 %v2697_v6 }
 0x22b   : > { %2728 = vmatpush1.bf16.msra.mxu1 %v2727_v7  ;;  %2699 = vmatprep.subr.bf16.mxu0 %v3012_v5 }
 0x22c   : > { %2729 = vmatprep.subr.bf16.mxu1 %v3012_v5 }
 0x22e   : > { %2701 = vmatpush1.bf16.msra.mxu0 %v2700_v10 }
 0x22f   : > { %2731 = vmatpush1.bf16.msra.mxu1 %v2730_v11  ;;  %2702 = vmatprep.subr.bf16.mxu0 %v3012_v5 }
 0x230   : > { %2732 = vmatprep.subr.bf16.mxu1 %v3012_v5 }
 0x232   : > { %2704 = vmatpush1.bf16.msra.mxu0 %v2703_v14 }
 0x233   : > { %2734 = vmatpush1.bf16.msra.mxu1 %v2733_v15  ;;  %1460 = vmatprep.subr.mxu0 %v3013_v51 }
 0x234   : > { %1563 = vmatprep.subr.mxu1 %v3013_v51 }
 0x236   : > { %1461 = vmatpush1.msra.mxu0 %v2257_v9 }
 0x237   : > { %1564 = vmatpush1.msra.mxu1 %v2260_v16  ;;  %1485 = vmatmul.mubr.f32.vlgmr.msra.gmra.mrb[4].mxu0 %v3129_v0 }
 0x238   : > { %2735 = vmatprep.subr.bf16.mxu0 %v3012_v5  ;;  %2765 = vmatprep.subr.bf16.mxu1 %v3012_v5 }
 0x239   : > { %1588 = vmatmul.mubr.f32.vlgmr.msra.gmra.mrb[4].mxu1 %v3129_v0  ;;  %2737 = vmatpush1.bf16.msra.mxu0 %v3462_v49 }
 0x23a   : > { %2767 = vmatpush1.bf16.msra.mxu1 %v3466_v50  ;;  %2738 = vmatprep.subr.bf16.mxu0 %v3012_v5 }
 0x23b   : > { %2768 = vmatprep.subr.bf16.mxu1 %v3012_v5  ;;  %2285 = vmatprep.mubr.msk.f32.mxu0 %vm1008_vm3, %v3134_v1 }
 0x23c   : > { %2309 = vmatprep.mubr.msk.f32.mxu1 %vm1008_vm3, %v3134_v1  ;;  %v2303_v1 = vld [vmem:[%s3393_s19 + $0x120] sm:$0xff] }
 0x23d   : > { %2740 = vmatpush1.bf16.msra.mxu0 %v3504_v54  ;;  %v2787_v18 = vpack.c.bf16 %v2303_v1, %v2260_v16  ;;  %v2763_v25 = vpack.c.bf16 %v2304_v19, %v2303_v1 }
 0x23e   : > { %2770 = vmatpush1.bf16.msra.mxu1 %v3508_v55  ;;  %2741 = vmatprep.subr.bf16.mxu0 %v3012_v5 }
 0x23f   : > { %2771 = vmatprep.subr.bf16.mxu1 %v3012_v5 }
 0x241   : > { %2743 = vmatpush1.bf16.msra.mxu0 %v3514_v58 }
 0x242   : > { %2773 = vmatpush1.bf16.msra.mxu1 %v3518_v59  ;;  %2744 = vmatprep.subr.bf16.mxu0 %v3012_v5 }
 0x243   : > { %2774 = vmatprep.subr.bf16.mxu1 %v3012_v5  ;;  %v973_v28 = vpop.xlane.xlu0 %972 }
 0x244   : > { %v974_v29 = vmul.f32 0.00390625, %v973_v28 }
 0x245   : > { %2746 = vmatpush1.bf16.msra.mxu0 %v3524_v62 }
 0x246   : > { %2776 = vmatpush1.bf16.msra.mxu1 %v3528_v63  ;;  %2747 = vmatprep.subr.bf16.mxu0 %v3012_v5  ;;  %v980_v30 = vmul.f32 %v974_v29, %v974_v29 }
 0x247   : > { %2777 = vmatprep.subr.bf16.mxu1 %v3012_v5  ;;  %v978_v3 = vpop.xlane.xlu0 %977 }
 0x248   : > { %v979_v31 = vmul.f32 0.00390625, %v978_v3 }
 0x249   : > { %2749 = vmatpush1.bf16.msra.mxu0 %v2697_v6 }
 0x24a   : > { %2779 = vmatpush1.bf16.msra.mxu1 %v2727_v7  ;;  %2750 = vmatprep.subr.bf16.mxu0 %v3012_v5 }
 0x24b   : > { %2780 = vmatprep.subr.bf16.mxu1 %v3012_v5 }
 0x24d   : > { %2752 = vmatpush1.bf16.msra.mxu0 %v2700_v10 }
 0x24e   : > { %2782 = vmatpush1.bf16.msra.mxu1 %v2730_v11  ;;  %2753 = vmatprep.subr.bf16.mxu0 %v3012_v5 }
 0x24f   : > { %2783 = vmatprep.subr.bf16.mxu1 %v3012_v5 }
 0x251   : > { %2755 = vmatpush1.bf16.msra.mxu0 %v2703_v14 }
 0x252   : > { %2785 = vmatpush1.bf16.msra.mxu1 %v2733_v15  ;;  %2756 = vmatprep.subr.bf16.mxu0 %v3012_v5 }
 0x253   : > { %2786 = vmatprep.subr.bf16.mxu1 %v3012_v5 }
 0x255   : > { %2758 = vmatpush1.bf16.msra.mxu0 %v2757_v17 }
 0x256   : > { %2788 = vmatpush1.bf16.msra.mxu1 %v2787_v18  ;;  %2759 = vmatprep.subr.bf16.mxu0 %v3012_v5 }
 0x257   : > { %2789 = vmatprep.subr.bf16.mxu1 %v3012_v5 }
 0x259   : > { %2761 = vmatpush1.bf16.msra.mxu0 %v2760_v21 }
 0x25a   : > { %2791 = vmatpush1.bf16.msra.mxu1 %v2790_v22  ;;  %2762 = vmatprep.subr.bf16.mxu0 %v3012_v5 }
 0x25b   : > { %2792 = vmatprep.subr.bf16.mxu1 %v3012_v5  ;;  %v981_v5 = vsub.f32 %v979_v31, %v980_v30 }
 0x25d   : > { %2764 = vmatpush1.bf16.msra.mxu0 %v2763_v25  ;;  %v982_v32 = vmax.f32 %v981_v5, 0.0 }
 0x25e   : > { %2794 = vmatpush1.bf16.msra.mxu1 %v2793_v26  ;;  %1666 = vmatprep.subr.mxu0 %v3013_v51 }
 0x25f   : > { %1769 = vmatprep.subr.mxu1 %v3013_v51  ;;  %v983_v33 = vadd.f32 1e-05, %v982_v32 }
 0x261   : > { %1667 = vmatpush1.msra.mxu0 %v2305_v20  ;;  %2895 = vrsqrt.f32 %v983_v33 }
 0x262   : > { %1770 = vmatpush1.msra.mxu1 %v2308_v27  ;;  %1691 = vmatmul.mubr.f32.vlgmr.msra.gmra.mrb[6].mxu0 %v3129_v0 }
 0x263   : > { %1794 = vmatmul.mubr.f32.vlgmr.msra.gmra.mrb[6].mxu1 %v3129_v0 }
 0x26b   : > { %v2896_v34 = vpop.eup %2895 }
 0x2b4   : > { %v1078_v35 = vpop.f32.mrb[0].mxu0 }
 0x2b5   : > { %v1082_v36 = vsub.f32 %v1078_v35, %v974_v29  ;;  %v1080_v37 = vpop.f32.mrb[1].mxu0 }
 0x2b6   : > { %v1177_v38 = vpop.f32.mrb[0].mxu1 }
 0x2b7   : > { %v1083_v39 = vmul.f32 %v2896_v34, %v1082_v36  ;;  %v1181_v40 = vsub.f32 %v1177_v38, %v974_v29  ;;  %v1179_v41 = vpop.f32.mrb[1].mxu1 }
 0x2b9   : > { %v1084_v42 = vmax.f32 %v1083_v39, 0.0  ;;  %v1182_v0 = vmul.f32 %v2896_v34, %v1181_v40 }
 0x2bb   : > { %1085 = vst.msk [vmem:[%s3146_s3] sm:$0xff] %vm970_vm4, %v1084_v42  ;;  %v1183_v43 = vmax.f32 %v1182_v0, 0.0 }
 0x2bd   : > { %1185 = vrot.lane.b32.xlu1 %v1183_v43, %s3014_s20 }
 0x2df   : > { %v1280_v44 = vpop.f32.mrb[2].mxu0 }
 0x2e0   : > { %v1284_v45 = vsub.f32 %v1280_v44, %v974_v29  ;;  %v1282_v46 = vpop.f32.mrb[3].mxu0 }
 0x2e1   : > { %v1383_v47 = vpop.f32.mrb[2].mxu1 }
 0x2e2   : > { %v1285_v48 = vmul.f32 %v2896_v34, %v1284_v45  ;;  %v1387_v49 = vsub.f32 %v1383_v47, %v974_v29  ;;  %v1385_v50 = vpop.f32.mrb[3].mxu1 }
 0x2e4   : > { %v1286_v51 = vmax.f32 %v1285_v48, 0.0  ;;  %v1388_v52 = vmul.f32 %v2896_v34, %v1387_v49 }
 0x2e6   : > { %v1389_v53 = vmax.f32 %v1388_v52, 0.0  ;;  %1288 = vrot.lane.b32.xlu1 %v1286_v51, %s3015_s24 }
 0x2e8   : > { %1391 = vrot.lane.b32.xlu0 %v1389_v53, %s3016_s26 }
 0x30a   : > { %v1486_v54 = vpop.f32.mrb[4].mxu0 }
 0x30b   : > { %v1490_v55 = vsub.f32 %v1486_v54, %v974_v29  ;;  %v1488_v56 = vpop.f32.mrb[5].mxu0 }
 0x30c   : > { %v1589_v57 = vpop.f32.mrb[4].mxu1 }
 0x30d   : > { %v1491_v58 = vmul.f32 %v2896_v34, %v1490_v55  ;;  %v1593_v59 = vsub.f32 %v1589_v57, %v974_v29  ;;  %v1591_v60 = vpop.f32.mrb[5].mxu1 }
 0x30f   : > { %v1492_v61 = vmax.f32 %v1491_v58, 0.0  ;;  %v1594_v62 = vmul.f32 %v2896_v34, %v1593_v59 }
 0x311   : > { %v1595_v63 = vmax.f32 %v1594_v62, 0.0  ;;  %1494 = vrot.lane.b32.xlu1 %v1492_v61, %s3017_s28 }
 0x315   : > { %1597 = vrot.lane.b32.xlu1 %v1595_v63, %s3018_s29 }
 0x32f   : > { %v1186_v2 = vpop.permute.xlu1 %1185 }
 0x330   : > { %1189 = vst.msk [vmem:[%s3146_s3] sm:$0xff] %vm1188_vm5, %v1186_v2 }
 0x335   : > { %v1692_v4 = vpop.f32.mrb[6].mxu0 }
 0x336   : > { %v1696_v6 = vsub.f32 %v1692_v4, %v974_v29  ;;  %v1795_v7 = vpop.f32.mrb[6].mxu1  ;;  %v1694_v8 = vpop.f32.mrb[7].mxu0 }
 0x337   : > { %v1799_v9 = vsub.f32 %v1795_v7, %v974_v29  ;;  %v1797_v10 = vpop.f32.mrb[7].mxu1 }
 0x338   : > { %v1697_v11 = vmul.f32 %v2896_v34, %v1696_v6 }
 0x339   : > { %v1800_v13 = vmul.f32 %v2896_v34, %v1799_v9 }
 0x33a   : > { %v1698_v12 = vmax.f32 %v1697_v11, 0.0 }
 0x33b   : > { %v1801_v14 = vmax.f32 %v1800_v13, 0.0 }
 0x33c   : > { %1700 = vrot.lane.b32.xlu1 %v1698_v12, %s3019_s30 }
 0x340   : > { %1803 = vrot.lane.b32.xlu1 %v1801_v14, %s3020_s6 }
 0x358   : > { %v1289_v15 = vpop.permute.xlu1 %1288 }
 0x359   : > { %1292 = vst.msk [vmem:[%s3146_s3] sm:$0xff] %vm1291_vm6, %v1289_v15 }
 0x35a   : > { %v1392_v16 = vpop.permute.xlu0 %1391 }
 0x35b   : > { %1395 = vst.msk [vmem:[%s3146_s3] sm:$0xff] %vm1394_vm7, %v1392_v16 }
 0x383   : > { %v1495_v1 = vpop.permute.xlu1 %1494 }
 0x384   : > { %1498 = vst.msk [vmem:[%s3146_s3] sm:$0xff] %vm1497_vm8, %v1495_v1 }
 0x387   : > { %v1598_v17 = vpop.permute.xlu1 %1597 }
 0x388   : > { %1601 = vst.msk [vmem:[%s3146_s3] sm:$0xff] %vm1600_vm9, %v1598_v17 }
 0x3ae   : > { %v1701_v18 = vpop.permute.xlu1 %1700 }
 0x3af   : > { %1704 = vst.msk [vmem:[%s3146_s3] sm:$0xff] %vm1703_vm10, %v1701_v18 }
 0x3b2   : > { %v1804_v19 = vpop.permute.xlu1 %1803 }
 0x3b3   : > { %1807 = vst.msk [vmem:[%s3146_s3] sm:$0xff] %vm1806_vm11, %v1804_v19 }
 0x3b4 PF: > { %s1816_s7 = smul.u32 %s2983_s12, %s2987_s13  ;;  %s2311_s8 = sshll.u32 %s2991_s14, 1 }
 0x3b5   : > { %s1825_s19 = sshll.u32 %s3146_s3, 4  ;;  %s1809_s30 = scalar_lea.sflag [#allocation5], %s157_s5  ;;  %s3641_s19 = int_to_ptr.vmem [resolvable:$true] %s1825_s19 }
 0x3b6   : > { %s1821_s20 = sadd.s32 %s2311_s8, %s1816_s7  ;;  %s2897_s6 = scalar_lea.vmem %s3641_s19, 128 }
 0x3b7   : > { %s2312_s24 = sshll.u32 %s1821_s20, 7  ;;  %p2898_p6 = scmp.ne.s32.totalorder %s3641_s19, %s2897_s6 }
 0x3b8   : > { %s1823_s29 = scalar_lea.hbm %s3700_s2, %s2312_s24  ;;  %s3021_s12 = smov [#allocation4]  }
 0x3b9   : > { %p2899_p8 = pnand %p2898_p6, %p3101_p5  ;;  %s2901_s13 = sshll.u32 %s3021_s12, 4  ;;  %s2902_s13 = int_to_ptr.vmem [resolvable:$false] %s2901_s13 }
 0x3ba   : > { %s2903_s14 = scalar_lea.vmem %s2902_s13, 256  ;;  %p2904_p10 = scmp.lt.s32.totalorder %s3641_s19, %s2902_s13 }
 0x3bb   : > { %p2900_p9 = pneg %p2899_p8  ;;  %p2905_p11 = scmp.lt.s32.totalorder %s2903_s14, %s2897_s6 }
 0x3bd   : > { %p2906_p12 = por %p2905_p11, %p2904_p10 }
 0x3bf   : > { %p2907_p13 = pnand %p2906_p12, %p2900_p9 }
 0x3c1   : > { %2910 = shalt.err (!%p2907_p13)
}
 0x3c2   : > { %s2911_s3 = scalar_lea.hbm %s1823_s29, 128  ;;  %s2915_s8 = scalar_lea.hbm %s3700_s2, 512 }
 0x3c3   : > { %p2912_p0 = scmp.ne.s32.totalorder %s1823_s29, %s2911_s3  ;;  %p2916_p3 = scmp.lt.u32.totalorder %s1823_s29, %s3700_s2 }
 0x3c4   : > { %p2917_p4 = scmp.lt.u32.totalorder %s2915_s8, %s2911_s3  ;;  %p2919_p8 = scmp.lt.u32.totalorder %s2911_s3, %s1823_s29 }
 0x3c5   : > { %p2913_p1 = pnand %p2912_p0, %p3101_p5 }
 0x3c6   : > { %p2918_p6 = por %p2917_p4, %p2916_p3 }
 0x3c7   : > { %p2914_p2 = pneg %p2913_p1 }
 0x3c8   : > { %p2920_p10 = por %p2919_p8, %p2918_p6 }
 0x3ca   : > { %p2921_p9 = pnand %p2920_p10, %p2914_p2 }
 0x3cc   : > { %2924 = shalt.err (!%p2921_p9)
}
 0x3cd   : > { %2796 = dma.vmem_to_hbm [thread:$0]  (%p3101_p5), %s3641_s19, 128, %s1823_s29, %s1809_s30  }
 0x3ce PF: > { %p2802_p11 = scmp.ge.s32.totalorder %s3007_s18, 2  ;;  %s1837_s26 = sand.u32 1, %s2971_s9  }
 0x3cf   : > { %s1838_s28 = scalar_lea.sflag [#allocation5], %s1837_s26 }
 0x3d0   : > { %p2799_p12 = pnand %p2802_p11, %p3110_p7 }
 0x3d2   : > { %2966 = dma.done.wait (!%p2799_p12), %s1838_s28, 128  }
 0x3d3   : > { %2968 = vsyncadd (!%p2799_p12), %s1838_s28, 4294967168  ;;  %s15_s18 = sadd.s32 1, %s3007_s18   ;;  %s3703_s9 = smov %s2975_s10 }
 0x3d4   : > { %p12_p13 = scmp.ge.s32.totalorder %s15_s18, 10   ;;  %s3704_s10 = smov %s2979_s11 }
 0x3d5   : > { %s3705_s11 = smov %s3122_s4  ;;  %s3706_s12 = smov %s2995_s15 }
 0x3d6   : > { %s3707_s13 = smov %s2999_s16  ;;  %s3708_s14 = smov %s3003_s17 }
 0x3d7   : > { %s3709_s15 = smov %s3713_s21  ;;  %s3710_s16 = smov %s3717_s22 }
 0x3d8   : > { %s3711_s17 = smov %s3721_s23  ;;  %14 = sbr.rel (!%p12_p13) target bundleno = 6 (0x6), region = 91 }
 0x3df   :  { %1843 = vsyncpa [#allocation5], 1 }
 0x3e0   :  { %1845 = vsyncpa [#allocation5 + $0x1], 1 }

</bundles_post_ra>
